<compile_context>
chip_gen: v6e
topology: v6e:2x2x1
jax: 0.10.0
libtpu: 0.0.40
codegen_flags: <defaults>
</compile_context>

<pallas_src>
import functools

import jax
import jax.numpy as jnp
from jax import lax
from jax.experimental import pallas as pl
from jax.experimental.pallas import tpu as pltpu


def _round_up(x, m):
    return ((x + m - 1) // m) * m


# ----------------------------------------------------------------------------
# Kernel 1: fused gram/cross products from a single (deduplicated) input.
#   gram  = x0 @ x0.T      x0 = sf[:, 0:T-1]
#   cross = x1 @ x0.T      x1 = sf[:, 1:T]
# sf is passed once, zero-padded on the lane axis; x0/x1 are in-kernel
# ref-slices of the same VMEM tile. Contractions use dot_general 'NT' form.
# ----------------------------------------------------------------------------
def _gram_cross_kernel(sf_ref, gram_ref, cross_ref, *, k_pad, k_valid):
    # x0: columns [0, k_pad) of sf; only the first k_valid columns are real
    # x0 data, column k_valid holds the last timestep (belongs to x1 only) and
    # must be zeroed; columns > k_valid are already zero padding.
    x0 = sf_ref[:, pl.ds(0, k_pad)]
    col = lax.broadcasted_iota(jnp.int32, x0.shape, 1)
    x0 = jnp.where(col < k_valid, x0, 0.0)
    # x1: columns [1, 1 + k_pad) of sf; columns >= k_valid are zero padding
    # already, so no mask is needed.
    x1 = sf_ref[:, pl.ds(1, k_pad)]

    # 'NT' contraction (contract the last dim of both operands) -> MXU-native,
    # no explicit transpose.
    dn = (((1,), (1,)), ((), ()))
    gram_ref[...] = lax.dot_general(x0, x0, dn,
                                    preferred_element_type=jnp.float32)
    cross_ref[...] = lax.dot_general(x1, x0, dn,
                                     preferred_element_type=jnp.float32)


def gram_and_cross(static_feat):
    """Returns (x0 @ x0.T, x1 @ x0.T) for x0 = sf[:, :-1], x1 = sf[:, 1:]."""
    n, t = static_feat.shape
    k_valid = t - 1                       # true contraction length
    k_pad = _round_up(k_valid, 128)       # lane-aligned contraction for MXU
    w = k_pad + 128                       # padded width (>= t and >= k_pad+1)

    sf_p = jnp.zeros((n, w), jnp.float32).at[:, :t].set(
        static_feat.astype(jnp.float32))

    flops = 2 * (2 * n * n * k_pad)
    bytes_accessed = 4 * (n * w + 2 * n * n)

    kernel = functools.partial(_gram_cross_kernel, k_pad=k_pad, k_valid=k_valid)
    return pl.pallas_call(
        kernel,
        out_shape=(
            jax.ShapeDtypeStruct((n, n), jnp.float32),
            jax.ShapeDtypeStruct((n, n), jnp.float32),
        ),
        grid=(1,),
        in_specs=[pl.BlockSpec((n, w), lambda i: (0, 0))],
        out_specs=(
            pl.BlockSpec((n, n), lambda i: (0, 0)),
            pl.BlockSpec((n, n), lambda i: (0, 0)),
        ),
        compiler_params=pltpu.CompilerParams(
            dimension_semantics=("arbitrary",),
            vmem_limit_bytes=32 * 1024 * 1024,
        ),
        cost_estimate=pl.CostEstimate(
            flops=flops, transcendentals=0, bytes_accessed=bytes_accessed),
    )(sf_p)


# ----------------------------------------------------------------------------
# Kernel 2: tiled matmul  o = a @ b   (used for cross @ pinv(gram) at large N)
# Standard P1+P3 pattern: f32 accumulator scratch, pl.when init/writeback,
# reduction axis last and "arbitrary", M/N axes "parallel" (megacore on v7x).
# Tiles of 256 keep the per-step VMEM budget well inside v7x's 64 MiB.
# ----------------------------------------------------------------------------
def _matmul_kernel(a_ref, b_ref, o_ref, acc_ref):
    @pl.when(pl.program_id(2) == 0)
    def _():
        acc_ref[...] = jnp.zeros_like(acc_ref)

    acc_ref[...] += jnp.dot(a_ref[...], b_ref[...],
                            preferred_element_type=jnp.float32)

    @pl.when(pl.program_id(2) == pl.num_programs(2) - 1)
    def _():
        o_ref[...] = acc_ref[...].astype(o_ref.dtype)


def matmul(a, b, *, tm=256, tn=256, tk=256):
    m, k = a.shape
    k2, n = b.shape
    assert k == k2

    # Shrink tiles for small problems (keeps (8,128) alignment), pad to tile
    # multiples so the grid divides evenly; zero padding is exact for matmul.
    tm = min(tm, _round_up(m, 8))
    tn = min(tn, _round_up(n, 128))
    tk = min(tk, _round_up(k, 128))
    mp, np_, kp = _round_up(m, tm), _round_up(n, tn), _round_up(k, tk)

    a_p = jnp.zeros((mp, kp), jnp.float32).at[:m, :k].set(a.astype(jnp.float32))
    b_p = jnp.zeros((kp, np_), jnp.float32).at[:k, :n].set(b.astype(jnp.float32))

    flops = 2 * mp * np_ * kp
    bytes_accessed = 4 * (mp * kp + kp * np_ + mp * np_)

    out = pl.pallas_call(
        _matmul_kernel,
        out_shape=jax.ShapeDtypeStruct((mp, np_), jnp.float32),
        grid_spec=pltpu.PrefetchScalarGridSpec(
            num_scalar_prefetch=0,
            grid=(mp // tm, np_ // tn, kp // tk),
            in_specs=[
                pl.BlockSpec((tm, tk), lambda i, j, kk: (i, kk)),
                pl.BlockSpec((tk, tn), lambda i, j, kk: (kk, j)),
            ],
            out_specs=pl.BlockSpec((tm, tn), lambda i, j, kk: (i, j)),
            scratch_shapes=[pltpu.VMEM((tm, tn), jnp.float32)],
        ),
        compiler_params=pltpu.CompilerParams(
            dimension_semantics=("parallel", "parallel", "arbitrary"),
            vmem_limit_bytes=32 * 1024 * 1024,
        ),
        cost_estimate=pl.CostEstimate(
            flops=flops, transcendentals=0, bytes_accessed=bytes_accessed),
    )(a_p, b_p)
    return out[:m, :n]


# ----------------------------------------------------------------------------
# Forward math (jitted so the tiny-N epilogue fuses with the pinv).
# ----------------------------------------------------------------------------
@jax.jit
def _limg_forward(static_feat_full):
    # Single fused Pallas launch: gram = x0 @ x0.T, cross = x1 @ x0.T.
    gram, cross = gram_and_cross(static_feat_full)
    # TODO(synk): torch.linalg.pinv (SVD-based) has no Pallas equivalent; plain JAX.
    # Note: PyTorch runs this in f64; f32 Gram-then-pinv squares the condition
    # number, so ill-conditioned static features may deviate more than f64.
    pinv_gram = jnp.linalg.pinv(gram).astype(jnp.float32)
    n = static_feat_full.shape[0]
    if n >= 256:
        # Large N: tiled, double-buffered Pallas matmul.
        return matmul(cross, pinv_gram)
    # Tiny N: a second pallas_call launch costs more than the matmul itself;
    # let XLA fuse it with the pinv epilogue (per perf review).
    return cross @ pinv_gram


# ----------------------------------------------------------------------------
# LIMG module (JAX / Pallas version)
# ----------------------------------------------------------------------------
class LIMG:
    def __init__(self, num_nodes, max_num_edges, dim, static_feat,
                 alpha1=0.1, alpha2=2.0, self_loops=True):
        if static_feat is None:
            raise ValueError(
                "Please give static node features (e.g. part of the timeseries)")
        self.num_nodes = num_nodes
        self.tlag = 1
        sf = jnp.asarray(static_feat, jnp.float32)
        self._sf_full = sf                          # (N, T), DMA'd once
        self.static_feat = sf[:, 0:-self.tlag]      # x0, (N, T-1)
        self.static_feat1 = sf[:, self.tlag:]       # x1, (N, T-1)
        xd = self.static_feat.shape[1]
        self.dim = dim
        self.alpha1 = alpha1
        self.alpha2 = alpha2
        self.num_edges = max_num_edges
        self.self_loops = self_loops
        self.diag = jnp.eye(num_nodes, dtype=bool)

        # Deterministic init of the nn.Linear parameters (xd -> dim).
        # They are NOT used in forward(), but are part of the module state.
        bound = 1.0 / float(jnp.sqrt(jnp.float32(xd)))
        keys = jax.random.split(jax.random.PRNGKey(1234), 8)

        def _lin(kw, kb):
            w = jax.random.uniform(kw, (dim, xd), jnp.float32, -bound, bound)
            b = jax.random.uniform(kb, (dim,), jnp.float32, -bound, bound)
            return w, b

        self.lin1_w, self.lin1_b = _lin(keys[0], keys[1])
        self.lin2_w, self.lin2_b = _lin(keys[2], keys[3])
        self.linlag1_w, self.linlag1_b = _lin(keys[4], keys[5])
        self.linlag2_w, self.linlag2_b = _lin(keys[6], keys[7])

    def forward(self):
        return _limg_forward(self._sf_full)


if __name__ == "__main__":
    # Small shapes consistent with the module: 8 nodes, 16-step timeseries.
    num_nodes = 8
    seq = 16
    dim = 32
    max_num_edges = 16

    key = jax.random.PRNGKey(0)
    static_feat = jax.random.normal(key, (num_nodes, seq), dtype=jnp.float32)

    model = LIMG(num_nodes, max_num_edges, dim, static_feat)
    adj = jax.block_until_ready(model.forward())

    # Sanity check against pure-JAX reference of the same forward math.
    x0 = static_feat[:, :-1]
    x1 = static_feat[:, 1:]
    ref = x1 @ x0.T @ jnp.linalg.pinv(x0 @ x0.T)
    assert adj.shape == (num_nodes, num_nodes)
    assert jnp.allclose(adj, ref, rtol=1e-2, atol=1e-2)

    # Also exercise + validate the tiled large-N matmul path
    # (used by forward() when num_nodes >= 256).
    ka, kb = jax.random.split(jax.random.PRNGKey(1))
    a = jax.random.normal(ka, (320, 300), dtype=jnp.float32)
    b = jax.random.normal(kb, (300, 192), dtype=jnp.float32)
    c = jax.block_until_ready(matmul(a, b))
    assert jnp.allclose(c, a @ b, rtol=1e-2, atol=1e-2)

    print("KERNEL_OK")
</pallas_src>

<mosaic_0001>
module attributes {stable_mosaic.version = 11 : i64} {
  func.func @_gram_cross_kernel(%arg0: i32, %arg1: memref<8x256xf32, #tpu.memory_space<vmem>>, %arg2: memref<8x8xf32, #tpu.memory_space<vmem>>, %arg3: memref<8x8xf32, #tpu.memory_space<vmem>>) attributes {dimension_semantics = [#tpu.dimension_semantics<arbitrary>], iteration_bounds = array<i64: 1>, scalar_prefetch = 0 : i64, scratch_operands = 0 : i64, tpu.core_type = #tpu.core_type<tc>, window_params = [{pipeline_mode = #tpu.pipeline_mode<synchronous>, transform_indices = @transform_0, window_bounds = array<i64: 8, 256>}, {pipeline_mode = #tpu.pipeline_mode<synchronous>, transform_indices = @transform_1, window_bounds = array<i64: 8, 8>}, {pipeline_mode = #tpu.pipeline_mode<synchronous>, transform_indices = @transform_2, window_bounds = array<i64: 8, 8>}]} {
    %c0 = arith.constant 0 : index
    %c0_0 = arith.constant 0 : index
    %0 = vector.load %arg1[%c0, %c0_0] : memref<8x256xf32, #tpu.memory_space<vmem>>, vector<8x128xf32>
    %1 = tpu.iota {dimensions = array<i32: 1>} : vector<8x128xi32>
    %c15_i32 = arith.constant 15 : i32
    %2 = vector.broadcast %c15_i32 : i32 to vector<8x128xi32>
    %3 = arith.cmpi slt, %1, %2 : vector<8x128xi32>
    %cst = arith.constant 0.000000e+00 : f32
    %4 = vector.broadcast %cst : f32 to vector<8x128xf32>
    %5 = arith.select %3, %0, %4 : vector<8x128xi1>, vector<8x128xf32>
    %c0_1 = arith.constant 0 : index
    %c1 = arith.constant 1 : index
    %6 = vector.load %arg1[%c0_1, %c1] : memref<8x256xf32, #tpu.memory_space<vmem>>, vector<8x128xf32>
    %cst_2 = arith.constant dense<0.000000e+00> : vector<8x8xf32>
    %7 = tpu.matmul %5, %5, %cst_2 {dimension_numbers = #tpu.dot_dimension_numbers<[1], [1], [0], [0], [0, 0, 1, 0], [], []>} : vector<8x128xf32>, vector<8x128xf32>, vector<8x8xf32> -> vector<8x8xf32>
    %c0_3 = arith.constant 0 : index
    %c0_4 = arith.constant 0 : index
    %8 = vector.load %arg2[%c0_3, %c0_4] : memref<8x8xf32, #tpu.memory_space<vmem>>, vector<8x8xf32>
    tpu.vector_store %arg2[%c0_3, %c0_4], %7 {strides = array<i32>} : memref<8x8xf32, #tpu.memory_space<vmem>>, vector<8x8xf32>,
    %cst_5 = arith.constant dense<0.000000e+00> : vector<8x8xf32>
    %9 = tpu.matmul %6, %5, %cst_5 {dimension_numbers = #tpu.dot_dimension_numbers<[1], [1], [0], [0], [0, 0, 1, 0], [], []>} : vector<8x128xf32>, vector<8x128xf32>, vector<8x8xf32> -> vector<8x8xf32>
    %c0_6 = arith.constant 0 : index
    %c0_7 = arith.constant 0 : index
    %10 = vector.load %arg3[%c0_6, %c0_7] : memref<8x8xf32, #tpu.memory_space<vmem>>, vector<8x8xf32>
    tpu.vector_store %arg3[%c0_6, %c0_7], %9 {strides = array<i32>} : memref<8x8xf32, #tpu.memory_space<vmem>>, vector<8x8xf32>,
    return
  }
  func.func @transform_0(%arg0: i32) -> (i32, i32) {
    %c0_i32 = arith.constant 0 : i32
    %c0_i32_0 = arith.constant 0 : i32
    %c0_i32_1 = arith.constant 0 : i32
    return %c0_i32, %c0_i32_0 : i32, i32
  }
  func.func @transform_1(%arg0: i32) -> (i32, i32) {
    %c0_i32 = arith.constant 0 : i32
    %c0_i32_0 = arith.constant 0 : i32
    %c0_i32_1 = arith.constant 0 : i32
    return %c0_i32, %c0_i32_0 : i32, i32
  }
  func.func @transform_2(%arg0: i32) -> (i32, i32) {
    %c0_i32 = arith.constant 0 : i32
    %c0_i32_0 = arith.constant 0 : i32
    %c0_i32_1 = arith.constant 0 : i32
    return %c0_i32, %c0_i32_0 : i32, i32
  }
}

</mosaic_0001>

<bundles_post_ra>
// kernel: custom-call.61
= control target key start
LH: loop header
LB: loop body
LE: loop exit
PB: predicated region body
PF: predicated region fallthrough
CT: control target
= control target key end

     0   :  { %v401_v2 = vmov 0.0   ;;  %s424_s13 = smov 0   ;;  %s508_s0 = inlined_call_operand.vmem [shape: f32[16,8], index: 0, kind: input, shape index: {}]   ;;  %s509_s1 = inlined_call_operand.vmem [shape: f32[16,8], index: 1, kind: output, shape index: {0}]   ;;  %s510_s2 = inlined_call_operand.vmem [shape: f32[8], index: 2, kind: output, shape index: {1}]  }
   0x1   :  { %v34_v0 = vld [vmem:[%s508_s0] sm:$0xff]  ;;  %v36_v1 = vld [vmem:[%s508_s0 + $0x8] sm:$0xff]  ;;  %47 = vst [vmem:[#allocation2] sm:$0x1] %v401_v2 }
   0x2   :  { %42 = vst [vmem:[#allocation1] sm:$0xff] %v34_v0  ;;  %46 = vst [vmem:[#allocation1 + $0x8] sm:$0xff] %v36_v1 }
   0x3 LB: > { %v55_v3 = vlaneseq  ;;  %v433_v6 = vstv %s399_s13  ;;  %s92_s0 = scalar_lea.vmem [#allocation1], %s399_s13  ;;  %s128_s14 = smov [#allocation1]  ;;  %s399_s13 = sphi %s424_s13, %s53_s13  }
   0x4   : > { %s168_s15 = scalar_lea.vmem [#allocation4], %s399_s13  ;;  %s184_s16 = smov [#allocation1] }
   0x5   : > { %v430_v5 = vshrl.u32 %v55_v3, 7  ;;  %v459_v54 = vand.u32 127, %v55_v3  ;;  %s185_s17 = smov [#allocation4] }
   0x7   : > { %vm59_vm0 = vcmp.gt.s32.totalorder %v430_v5, %v433_v6  ;;  %v66_v8 = vadd.s32 8, %v430_v5  ;;  %v131_v5 = vmov %v430_v5  ;;  %vm463_vm12 = vcmp.eq.s32.totalorder %v459_v54, %v433_v6 }
   0x8   : > { %v150_v50 = vadd.s32 8, %v131_v5  ;;  %vm135_vm10 = vcmp.gt.s32.totalorder %v131_v5, %v433_v6  ;;  %v188_v5 = vmov %v430_v5 }
   0x9   : > { %v54_v4 = vld [vmem:[#allocation1] sm:$0xff]  ;;  %v63_v7 = vld [vmem:[#allocation1 + $0x8] sm:$0xff]  ;;  %vm68_vm1 = vcmp.gt.s32.totalorder %v66_v8, %v433_v6 }
   0xa   : > { %v60_v9 = vsel %vm59_vm0, %v54_v4, 0.0  ;;  %v71_v11 = vsel %vm68_vm1, %v63_v7, 0.0  ;;  %v93_v20 = vld [vmem:[%s92_s0] ss:$0 sm:$0xff]  ;;  %vm152_vm8 = vcmp.gt.s32.totalorder %v150_v50, %v433_v6  ;;  %vm153_vm9 = vcmp.lt.s32.totalorder %v150_v50, 16  ;;  %v367_v53 = vld [vmem:[%s128_s14 + $0x8] sm:$0xff] }
   0xb   : > { %v61_v10 = vmul.f32 %v60_v9, %v60_v9  ;;  %v72_v12 = vmul.f32 %v71_v11, %v71_v11  ;;  %v94_v21 = vand.u32 2147483647, %v93_v20  ;;  %vm119_vm7 = vcmp.lt.f32.partialorder %v93_v20, 0.0  ;;  %v132_v52 = vld [vmem:[%s128_s14] sm:$0xff]  ;;  %vm154_vm11 = vmand %vm152_vm8, %vm153_vm9  ;;  %v181_v7 = vld [vmem:[#allocation2] ss:$0 sm:$0xff] }
   0xc   : > { %v136_v56 = vsel %vm135_vm10, %v132_v52, 0.0  ;;  %v155_v57 = vsel %vm154_vm11, %v367_v53, 0.0  ;;  %vm221_vm0 = vcmp.gt.s32.totalorder %v459_v54, %v433_v6 }
   0xd   : > { %v73_v13 = vadd.f32 %v72_v12, %v61_v10  ;;  %v95_v26 = vmax.f32 %v94_v21, 0.0  ;;  %v402_v12 = vmov 1.0  }
   0xf   : > { %v74_v14 = vrot.slane %v73_v13, 4 }
  0x11   : > { %v75_v15 = vadd.f32 %v74_v14, %v73_v13  ;;  %v193_v13 = vadd.s32 8, %v188_v5  ;;  %v191_v14 = vld [vmem:[%s184_s16] sm:$0xff]  ;;  %v212_v5 = vmov %v430_v5 }
  0x12   : > { %vm229_vm14 = vcmp.ge.s32.totalorder %v212_v5, %v433_v6 }
  0x13   : > { %v76_v16 = vrot.slane %v75_v15, 2  ;;  %vm199_vm13 = vcmp.lt.s32.totalorder %v193_v13, 16  ;;  %vm230_vm1 = vmand %vm463_vm12, %vm229_vm14 }
  0x15   : > { %v77_v17 = vadd.f32 %v76_v16, %v75_v15  ;;  %v369_v15 = vld [vmem:[%s184_s16 + $0x8] sm:$0xff]  ;;  %s208_s16 = smov %s184_s16 }
  0x16   : > { %s254_s18 = scalar_lea.vmem %s208_s16, %s399_s13  ;;  %s53_s13 = sadd.s32 1, %s399_s13  }
  0x17   : > { %v78_v18 = vrot.slane %v77_v17, 1  ;;  %p50_p0 = scmp.ge.s32.totalorder %s53_s13, 8  }
  0x19   : > { %v439_v19 = vadd.f32 %v78_v18, %v77_v17 }
  0x1b   : > { %383 = vrsqrt.f32 %v439_v19  ;;  %vm82_vm2 = vcmp.eq.f32.partialorder %v439_v19, inf  ;;  %v85_v23 = vand.u32 2147483648, %v439_v19  ;;  %vm84_vm3 = vcmp.eq.f32.partialorder %v439_v19, 0.0 }
  0x28   : > { %v384_v22 = vpop.eup %383 }
  0x29   : > { %v81_v24 = vmul.f32 %v384_v22, %v439_v19 }
  0x2b   : > { %v83_v25 = vsel %vm82_vm2, %v439_v19, %v81_v24 }
  0x2c   : > { %v86_v27 = vsel %vm84_vm3, %v85_v23, %v83_v25 }
  0x2d   : > { %v96_v28 = vand.u32 2147483647, %v86_v27  ;;  %v233_v27 = vadd.s32 8, %v212_v5 }
  0x2f   : > { %v97_v29 = vmax.f32 %v95_v26, %v96_v28  ;;  %vm250_vm15 = vcmp.ge.s32.totalorder %v233_v27, %v433_v6 }
  0x30   : > { %vm251_vm2 = vmand %vm463_vm12, %vm250_vm15 }
  0x31   : > { %385 = vrcp.f32 %v97_v29  ;;  %vm109_vm6 = vcmp.eq.f32.partialorder %v97_v29, 0.0 }
  0x3e   : > { %v386_v30 = vpop.eup %385 }
  0x3f   : > { %v99_v31 = vmul.f32 %v386_v30, %v94_v21  ;;  %v102_v32 = vmul.f32 0.0, %v386_v30  ;;  %v106_v33 = vmul.f32 %v386_v30, %v96_v28 }
  0x41   : > { %v100_v34 = vmul.f32 %v99_v31, %v99_v31  ;;  %v103_v35 = vmul.f32 %v102_v32, %v102_v32  ;;  %v107_v36 = vmul.f32 %v106_v33, %v106_v33  ;;  %v371_v33 = vld [vmem:[%s208_s16 + $0x8] sm:$0xff] }
  0x43   : > { %v104_v37 = vadd.f32 %v103_v35, %v100_v34 }
  0x45   : > { %v108_v38 = vadd.f32 %v107_v36, %v104_v37 }
  0x47   : > { %387 = vrsqrt.f32 %v108_v38  ;;  %vm112_vm4 = vcmp.eq.f32.partialorder %v108_v38, inf  ;;  %v115_v40 = vand.u32 2147483648, %v108_v38  ;;  %vm114_vm5 = vcmp.eq.f32.partialorder %v108_v38, 0.0 }
  0x54   : > { %v388_v39 = vpop.eup %387 }
  0x55   : > { %v111_v41 = vmul.f32 %v388_v39, %v108_v38 }
  0x57   : > { %v113_v42 = vsel %vm112_vm4, %v108_v38, %v111_v41 }
  0x58   : > { %v116_v43 = vsel %vm114_vm5, %v115_v40, %v113_v42 }
  0x59   : > { %v117_v44 = vmul.f32 %v116_v43, %v97_v29  ;;  %v219_v29 = vld [vmem:[%s208_s16] sm:$0xff] }
  0x5b   : > { %v118_v45 = vsel %vm109_vm6, 0.0, %v117_v44 }
  0x5c   : > { %v120_v46 = vxor.u32 2147483648, %v118_v45 }
  0x5e   : > { %v121_v47 = vsel %vm119_vm7, %v118_v45, %v120_v46 }
  0x5f   : > { %v452_v48 = vsel %vm84_vm3, %v93_v20, %v121_v47  ;;  %389 = vrcp.f32 %v121_v47  ;;  %v122_v51 = vsub.f32 %v121_v47, %v93_v20 }
  0x60   : > { %v127_v49 = vsub.f32 %v93_v20, %v452_v48 }
  0x62   : > { %391 = vrcp.f32 %v127_v49 }
  0x6c   : > { %v390_v55 = vpop.eup %389 }
  0x6d   : > { %v124_v58 = vmul.f32 %v390_v55, %v122_v51 }
  0x6f   : > { %v392_v59 = vpop.eup %391  ;;  %v126_v61 = vsel %vm84_vm3, 0.0, %v124_v58 }
  0x70   : > { %v138_v62 = vmul.f32 %v392_v59, %v136_v56  ;;  %v157_v63 = vmul.f32 %v392_v59, %v155_v57  ;;  %v174_v0 = vsel %vm463_vm12, %v126_v61, 0.0 }
  0x71   : > { %175 = vadd.xlane.f32.xlu1 %v174_v0 }
  0x72   : > { %v139_v1 = vsel %vm84_vm3, 0.0, %v138_v62  ;;  %v158_v2 = vsel %vm84_vm3, 0.0, %v157_v63 }
  0x73   : > { %v144_v3 = vsel %vm463_vm12, %v139_v1, 0.0  ;;  %v163_v4 = vsel %vm463_vm12, %v158_v2, 0.0 }
  0x74   : > { %145 = vadd.xlane.f32.xlu0 %v144_v3 }
  0x78   : > { %164 = vadd.xlane.f32.xlu0 %v163_v4 }
  0xfa   : > { %v176_v8 = vpop.xlane.xlu1 %175 }
  0xfb   : > { %v182_v9 = vsel %vm463_vm12, %v176_v8, %v181_v7 }
  0xfc   : > { %183 = vst [vmem:[#allocation2] sm:$0x1] %v182_v9 }
  0xfd   : > { %v146_v10 = vpop.xlane.xlu0 %145 }
  0xfe   : > { %147 = vst [vmem:[#allocation4] sm:$0xff] %v146_v10 }
 0x101   : > { %v165_v11 = vpop.xlane.xlu0 %164 }
 0x102   : > { %167 = vst [vmem:[#allocation4 + $0x8] sm:$0xff] %v165_v11 }
 0x103   : > { %169 = vst [vmem:[%s168_s15] sm:$0x1] %v402_v12  ;;  %v266_v42 = vld [vmem:[#allocation2] sm:$0x1] (%p50_p0) }
 0x104   :  { %269 = vst [vmem:[#allocation3] sm:$0x1] (%p50_p0), %v266_v42 }
 0x10a   : > { %v190_v16 = vld [vmem:[%s185_s17] sm:$0xff]  ;;  %v368_v17 = vld [vmem:[%s185_s17 + $0x8] sm:$0xff]  ;;  %s209_s17 = smov %s185_s17 }
 0x10b   : > { %v192_v18 = vmul.f32 %v191_v14, %v190_v16  ;;  %v198_v19 = vmul.f32 %v369_v15, %v368_v17  ;;  %v217_v31 = vld [vmem:[%s209_s17] sm:$0xff]  ;;  %v370_v32 = vld [vmem:[%s209_s17 + $0x8] sm:$0xff]  ;;  %v325_v45 = vld [vmem:[#allocation3] sm:$0x1] (%p50_p0) }
 0x10c   :  { %326 = vst [vmem:[%s510_s2] sm:$0x1] (%p50_p0), %v325_v45 }
 0x10d   : > { %v200_v20 = vsel %vm199_vm13, %v198_v19, 0.0 }
 0x10e   : > { %v201_v21 = vadd.f32 %v200_v20, %v192_v18 }
 0x110   : > { %v202_v22 = vrot.slane %v201_v21, 4 }
 0x112   : > { %v203_v23 = vadd.f32 %v202_v22, %v201_v21 }
 0x114   : > { %v204_v24 = vrot.slane %v203_v23, 2 }
 0x116   : > { %v205_v25 = vadd.f32 %v204_v24, %v203_v23 }
 0x118   : > { %v206_v26 = vrot.slane %v205_v25, 1 }
 0x11a   : > { %v207_v28 = vadd.f32 %v206_v26, %v205_v25 }
 0x11c   : > { %v213_v30 = vmul.f32 %v207_v28, %v176_v8 }
 0x11e   : > { %v218_v34 = vmul.f32 %v217_v31, %v213_v30  ;;  %v238_v35 = vmul.f32 %v370_v32, %v213_v30 }
 0x120   : > { %v222_v36 = vsub.f32 %v219_v29, %v218_v34  ;;  %v243_v5 = vsub.f32 %v371_v33, %v238_v35 }
 0x122   : > { %v223_v37 = vsel %vm221_vm0, %v222_v36, %v219_v29  ;;  %v244_v38 = vsel %vm221_vm0, %v243_v5, %v371_v33 }
 0x123   : > { %v231_v39 = vsel %vm230_vm1, %v217_v31, %v223_v37  ;;  %v252_v40 = vsel %vm251_vm2, %v370_v32, %v244_v38 }
 0x124   : > { %232 = vst [vmem:[%s208_s16] sm:$0xff] %v231_v39  ;;  %372 = vst [vmem:[%s208_s16 + $0x8] sm:$0xff] %v252_v40 }
 0x129   :  { %52 = sbr.rel (!%p50_p0) target bundleno = 3 (0x3), region = 148 }
 0x12b   : > { %v255_v41 = vld [vmem:[%s254_s18] ss:$0 sm:$0xff] }
 0x12c   : > { %v260_v6 = vsel %vm463_vm12, %v452_v48, %v255_v41 }
 0x12d   : > { %261 = vst [vmem:[%s254_s18] sm:$0x1] %v260_v6 }
 0x134   :  { %v300_v43 = vld [vmem:[#allocation1] sm:$0xff]  ;;  %v302_v44 = vld [vmem:[#allocation1 + $0x8] sm:$0xff] }
 0x135   :  { %301 = vst [vmem:[%s509_s1] sm:$0xff] %v300_v43  ;;  %303 = vst [vmem:[%s509_s1 + $0x8] sm:$0xff] %v302_v44 }

// kernel: custom-call.62
= control target key start
LH: loop header
LB: loop body
LE: loop exit
PB: predicated region body
PF: predicated region fallthrough
CT: control target
= control target key end

     0   :  { %s439_s6 = smov [#allocation0]   ;;  %s481_s0 = inlined_call_operand.vmem [shape: f32[8,8], index: 0, kind: input, shape index: {}]   ;;  %s482_s1 = inlined_call_operand.vmem [shape: f32[8,8], index: 1, kind: output, shape index: {}]  }
   0x1   :  { %s443_s9 = smov %s481_s0  }
   0x2 LB: > { %v49_v0 = vld [vmem:[%s445_s9] sm:$0xff]  ;;  %s51_s9 = scalar_lea.vmem %s445_s9, 8   ;;  %s445_s9 = sphi %s443_s9, %s51_s9   ;;  %s441_s6 = sphi %s439_s6, %s52_s6  }
   0x3   : > { %50 = vst [vmem:[%s441_s6] sm:$0xff] %v49_v0  ;;  %s52_s6 = scalar_lea.vmem %s441_s6, 8   ;;  %p46_p0 = scmp.gt.s32.totalorder %s51_s9, %s481_s0 }
   0x4   :  { %v65_v1 = vlaneseq (%p46_p0)  ;;  %vm79_vm0 = vcmask (%p46_p0), 64512   ;;  %s447_s13 = smov (%p46_p0), %s482_s1   ;;  %s451_s14 = smov (%p46_p0), [#allocation1]  }
   0x5   :  { %48 = sbr.rel (!%p46_p0) target bundleno = 2 (0x2), region = 87 }
   0x6   :  { %v66_v3 = vand.u32 (%p46_p0), 127, %v65_v1  ;;  %v68_v4 = vshrl.u32 (%p46_p0), %v65_v1, 7 }
   0x8   :  { %vm70_vm1 = vcmp.eq.s32.totalorder (%p46_p0), %v66_v3, %v68_v4  ;;  %vm74_vm2 = vcmp.eq.s32.totalorder (%p46_p0), %v66_v3, 0  ;;  %vm83_vm3 = vcmp.eq.s32.totalorder (%p46_p0), %v66_v3, 1  ;;  %vm94_vm4 = vcmp.eq.s32.totalorder (%p46_p0), %v66_v3, 2 }
   0x9   :  { %vm105_vm5 = vcmp.eq.s32.totalorder (%p46_p0), %v66_v3, 3  ;;  %vm116_vm6 = vcmp.eq.s32.totalorder (%p46_p0), %v66_v3, 4  ;;  %vm127_vm7 = vcmp.eq.s32.totalorder (%p46_p0), %v66_v3, 5  ;;  %vm138_vm8 = vcmp.eq.s32.totalorder (%p46_p0), %v66_v3, 6 }
   0xa   :  { %v78_v2 = vld [vmem:[#allocation0 + $0x1] ss:$0 sm:$0xff]  ;;  %v89_v10 = vld [vmem:[#allocation0 + $0x2] ss:$0 sm:$0xff]  ;;  %v100_v15 = vld [vmem:[#allocation0 + $0x3] ss:$0 sm:$0xff] }
   0xb   :  { %v71_v5 = vld [vmem:[#allocation0] sm:$0xff]  ;;  %v80_v6 = vsel %vm79_vm0, %v78_v2, 0.0  ;;  %v91_v11 = vsel %vm79_vm0, %v89_v10, 0.0  ;;  %v102_v16 = vsel %vm79_vm0, %v100_v15, 0.0  ;;  %vm149_vm9 = vcmp.eq.s32.totalorder %v66_v3, 7 }
   0xc   :  { %v75_v7 = vsel %vm74_vm2, %v71_v5, 1.0  ;;  %v111_v20 = vld [vmem:[#allocation0 + $0x4] ss:$0 sm:$0xff]  ;;  %v122_v25 = vld [vmem:[#allocation0 + $0x5] ss:$0 sm:$0xff] }
   0xd   :  { %v76_v8 = vsel %vm70_vm1, %v75_v7, 0.0  ;;  %v113_v21 = vsel %vm79_vm0, %v111_v20, 0.0  ;;  %v124_v26 = vsel %vm79_vm0, %v122_v25, 0.0  ;;  %v133_v30 = vld [vmem:[#allocation0 + $0x6] ss:$0 sm:$0xff] }
   0xe   :  { %v84_v9 = vmul.f32 %v80_v6, %v76_v8  ;;  %v135_v31 = vsel %vm79_vm0, %v133_v30, 0.0  ;;  %v144_v35 = vld [vmem:[#allocation0 + $0x7] ss:$0 sm:$0xff] }
   0xf   :  { %v146_v36 = vsel %vm79_vm0, %v144_v35, 0.0 }
  0x10   :  { %85 = vadd.xlane.f32.xlu0 %v84_v9 }
  0x99   :  { %v86_v12 = vpop.xlane.xlu0 %85 }
  0x9a   :  { %v87_v13 = vsel %vm83_vm3, %v86_v12, %v76_v8 }
  0x9b   :  { %v95_v14 = vmul.f32 %v91_v11, %v87_v13 }
  0x9d   :  { %96 = vadd.xlane.f32.xlu0 %v95_v14 }
 0x126   :  { %v97_v17 = vpop.xlane.xlu0 %96 }
 0x127   :  { %v98_v18 = vsel %vm94_vm4, %v97_v17, %v87_v13 }
 0x128   :  { %v106_v19 = vmul.f32 %v102_v16, %v98_v18 }
 0x12a   :  { %107 = vadd.xlane.f32.xlu1 %v106_v19 }
 0x1b3   :  { %v108_v22 = vpop.xlane.xlu1 %107 }
 0x1b4   :  { %v109_v23 = vsel %vm105_vm5, %v108_v22, %v98_v18 }
 0x1b5   :  { %v117_v24 = vmul.f32 %v113_v21, %v109_v23 }
 0x1b7   :  { %118 = vadd.xlane.f32.xlu1 %v117_v24 }
 0x240   :  { %v119_v27 = vpop.xlane.xlu1 %118 }
 0x241   :  { %v120_v28 = vsel %vm116_vm6, %v119_v27, %v109_v23 }
 0x242   :  { %v128_v29 = vmul.f32 %v124_v26, %v120_v28 }
 0x244   :  { %129 = vadd.xlane.f32.xlu0 %v128_v29 }
 0x2cd   :  { %v130_v32 = vpop.xlane.xlu0 %129 }
 0x2ce   :  { %v131_v33 = vsel %vm127_vm7, %v130_v32, %v120_v28 }
 0x2cf   :  { %v139_v34 = vmul.f32 %v135_v31, %v131_v33 }
 0x2d1   :  { %140 = vadd.xlane.f32.xlu1 %v139_v34 }
 0x35a   :  { %v141_v37 = vpop.xlane.xlu1 %140 }
 0x35b   :  { %v142_v38 = vsel %vm138_vm8, %v141_v37, %v131_v33 }
 0x35c   :  { %v150_v39 = vmul.f32 %v146_v36, %v142_v38 }
 0x35e   :  { %151 = vadd.xlane.f32.xlu0 %v150_v39 }
 0x3e7   :  { %v152_v40 = vpop.xlane.xlu0 %151 }
 0x3e8   :  { %v153_v41 = vsel %vm149_vm9, %v152_v40, %v142_v38  }
 0x3e9   :  { %154 = vst [vmem:[#allocation1] sm:$0xff] %v153_v41 }
 0x3ea LB:  { %s453_s14 = sphi %s451_s14, %s204_s14   ;;  %s449_s13 = sphi %s447_s13, %s205_s13  }
 0x3f0   : > { %v202_v42 = vld [vmem:[%s453_s14] sm:$0xff]  ;;  %s204_s14 = scalar_lea.vmem %s453_s14, 8  }
 0x3f1   : > { %203 = vst [vmem:[%s449_s13] sm:$0xff] %v202_v42  ;;  %s205_s13 = scalar_lea.vmem %s449_s13, 8   ;;  %p199_p1 = scmp.gt.s32.totalorder %s204_s14, [#allocation1] }
 0x3f3   :  { %201 = sbr.rel (!%p199_p1) target bundleno = 1002 (0x3ea), region = 109 }

// kernel: custom-call.59
= control target key start
LH: loop header
LB: loop body
LE: loop exit
PB: predicated region body
PF: predicated region fallthrough
CT: control target
= control target key end

     0   :  { %v266_v0 = vmov 0.0   ;;  %vm36_vm0 = vcmask 7168   ;;  %vm54_vm1 = vcmask 15368   ;;  %vm71_vm2 = vcmask 1047553   ;;  %s294_s0 = inlined_call_operand.vmem [shape: f32[8,8], index: 0, kind: input, shape index: {}]   ;;  %s295_s1 = inlined_call_operand.vmem [shape: f32[8,8], index: 1, kind: output, shape index: {}]  }
   0x1   :  { %35 = vst [vmem:[#allocation1] sm:$0xff] %v266_v0  ;;  %v280_v4 = vld [vmem:[%s294_s0] sm:$0xff]  ;;  %vm72_vm3 = vmand %vm54_vm1, %vm71_vm2  ;;  %vm76_vm4 = vcmask 23568   ;;  %vm93_vm5 = vcmask 1047554   ;;  %vm98_vm7 = vcmask 31768   ;;  %vm115_vm8 = vcmask 1047555  }
   0x2   :  { %31 = vst [vmem:[#allocation0] sm:$0xff] %v280_v4  ;;  %vm94_vm6 = vmand %vm76_vm4, %vm93_vm5  ;;  %vm120_vm10 = vcmask 39968   ;;  %vm137_vm11 = vcmask 1047556   ;;  %vm142_vm13 = vcmask 48168   ;;  %vm159_vm14 = vcmask 1047557  }
   0x3   :  { %vm116_vm9 = vmand %vm98_vm7, %vm115_vm8  ;;  %vm181_vm1 = vcmask 1047558   ;;  %vm203_vm4 = vcmask 1047559  }
   0x4   :  { %vm138_vm12 = vmand %vm120_vm10, %vm137_vm11 }
   0x5   :  { %vm160_vm15 = vmand %vm142_vm13, %vm159_vm14 }
   0x8   :  { %v37_v1 = vld [vmem:[#allocation1] ss:$0 sm:$0xff] }
   0x9   :  { %v39_v2 = vmul.f32 %v37_v1, %v37_v1  ;;  %v46_v3 = vmul.f32 0.0, %v37_v1  ;;  %v38_v5 = vld [vmem:[#allocation0] ss:$0 sm:$0xff]  ;;  %v58_v16 = vld [vmem:[#allocation0 + $0x1] ss:$0 sm:$0xff] }
   0xa   :  { %v80_v28 = vld [vmem:[#allocation0 + $0x2] ss:$0 sm:$0xff]  ;;  %v102_v40 = vld [vmem:[#allocation0 + $0x3] ss:$0 sm:$0xff]  ;;  %v124_v52 = vld [vmem:[#allocation0 + $0x4] ss:$0 sm:$0xff] }
   0xb   :  { %40 = vadd.xlane.f32.xlu0 %v39_v2  ;;  %v146_v0 = vld [vmem:[#allocation0 + $0x5] ss:$0 sm:$0xff] }
   0xf   :  { %47 = vadd.xlane.f32.xlu0 %v46_v3 }
  0x94   :  { %v41_v6 = vpop.xlane.xlu0 %40 }
  0x95   :  { %v42_v7 = vsub.f32 %v38_v5, %v41_v6 }
  0x97   :  { %250 = vrsqrt.f32 %v42_v7 }
  0x98   :  { %v48_v8 = vpop.xlane.xlu0 %47 }
  0x99   :  { %v49_v9 = vsub.f32 %v280_v4, %v48_v8 }
  0xa4   :  { %v251_v10 = vpop.eup %250 }
  0xa5   :  { %v50_v11 = vmul.f32 %v251_v10, %v49_v9 }
  0xa7   :  { %v51_v12 = vsel %vm36_vm0, %v50_v11, 0.0  ;;  %vm164_vm0 = vcmask 56368  }
  0xa8   :  { %53 = vst [vmem:[#allocation1] sm:$0xff] %v51_v12  ;;  %vm182_vm2 = vmand %vm164_vm0, %vm181_vm1 }
  0xaf   :  { %v56_v13 = vld [vmem:[#allocation1 + $0x1] ss:$0 sm:$0xff] }
  0xb0   :  { %v59_v14 = vmul.f32 %v56_v13, %v56_v13  ;;  %v66_v15 = vmul.f32 %v56_v13, %v51_v12  ;;  %v168_v13 = vld [vmem:[#allocation0 + $0x6] ss:$0 sm:$0xff] }
  0xb2   :  { %60 = vadd.xlane.f32.xlu1 %v59_v14 }
  0xb6   :  { %67 = vadd.xlane.f32.xlu1 %v66_v15 }
 0x13b   :  { %v61_v17 = vpop.xlane.xlu1 %60 }
 0x13c   :  { %v62_v18 = vsub.f32 %v58_v16, %v61_v17 }
 0x13e   :  { %252 = vrsqrt.f32 %v62_v18 }
 0x13f   :  { %v68_v19 = vpop.xlane.xlu1 %67 }
 0x140   :  { %v69_v20 = vsub.f32 %v280_v4, %v68_v19 }
 0x14b   :  { %v253_v21 = vpop.eup %252 }
 0x14c   :  { %v70_v22 = vmul.f32 %v253_v21, %v69_v20 }
 0x14e   :  { %v73_v23 = vsel %vm72_vm3, %v70_v22, 0.0  ;;  %vm186_vm3 = vcmask 64568  }
 0x14f   :  { %v74_v24 = vadd.f32 %v73_v23, %v51_v12  ;;  %vm204_vm5 = vmand %vm186_vm3, %vm203_vm4 }
 0x151   :  { %75 = vst [vmem:[#allocation1] sm:$0xff] %v74_v24 }
 0x158   :  { %v78_v25 = vld [vmem:[#allocation1 + $0x2] ss:$0 sm:$0xff] }
 0x159   :  { %v88_v26 = vmul.f32 %v78_v25, %v74_v24  ;;  %v81_v27 = vmul.f32 %v78_v25, %v78_v25  ;;  %v190_v25 = vld [vmem:[#allocation0 + $0x7] ss:$0 sm:$0xff] }
 0x15b   :  { %89 = vadd.xlane.f32.xlu1 %v88_v26  ;;  %82 = vadd.xlane.f32.xlu0 %v81_v27 }
 0x1e4   :  { %v83_v29 = vpop.xlane.xlu0 %82  ;;  %v90_v31 = vpop.xlane.xlu1 %89 }
 0x1e5   :  { %v84_v30 = vsub.f32 %v80_v28, %v83_v29  ;;  %v91_v32 = vsub.f32 %v280_v4, %v90_v31 }
 0x1e7   :  { %254 = vrsqrt.f32 %v84_v30 }
 0x1f4   :  { %v255_v33 = vpop.eup %254 }
 0x1f5   :  { %v92_v34 = vmul.f32 %v255_v33, %v91_v32 }
 0x1f7   :  { %v95_v35 = vsel %vm94_vm6, %v92_v34, 0.0 }
 0x1f8   :  { %v96_v36 = vadd.f32 %v95_v35, %v74_v24 }
 0x1fa   :  { %97 = vst [vmem:[#allocation1] sm:$0xff] %v96_v36 }
 0x201   :  { %v100_v37 = vld [vmem:[#allocation1 + $0x3] ss:$0 sm:$0xff] }
 0x202   :  { %v110_v38 = vmul.f32 %v100_v37, %v96_v36  ;;  %v103_v39 = vmul.f32 %v100_v37, %v100_v37 }
 0x204   :  { %111 = vadd.xlane.f32.xlu1 %v110_v38  ;;  %104 = vadd.xlane.f32.xlu0 %v103_v39 }
 0x28d   :  { %v105_v41 = vpop.xlane.xlu0 %104  ;;  %v112_v43 = vpop.xlane.xlu1 %111 }
 0x28e   :  { %v106_v42 = vsub.f32 %v102_v40, %v105_v41  ;;  %v113_v44 = vsub.f32 %v280_v4, %v112_v43 }
 0x290   :  { %256 = vrsqrt.f32 %v106_v42 }
 0x29d   :  { %v257_v45 = vpop.eup %256 }
 0x29e   :  { %v114_v46 = vmul.f32 %v257_v45, %v113_v44 }
 0x2a0   :  { %v117_v47 = vsel %vm116_vm9, %v114_v46, 0.0 }
 0x2a1   :  { %v118_v48 = vadd.f32 %v117_v47, %v96_v36 }
 0x2a3   :  { %119 = vst [vmem:[#allocation1] sm:$0xff] %v118_v48 }
 0x2aa   :  { %v122_v49 = vld [vmem:[#allocation1 + $0x4] ss:$0 sm:$0xff] }
 0x2ab   :  { %v132_v50 = vmul.f32 %v122_v49, %v118_v48  ;;  %v125_v51 = vmul.f32 %v122_v49, %v122_v49 }
 0x2ad   :  { %133 = vadd.xlane.f32.xlu1 %v132_v50  ;;  %126 = vadd.xlane.f32.xlu0 %v125_v51 }
 0x336   :  { %v127_v53 = vpop.xlane.xlu0 %126  ;;  %v134_v55 = vpop.xlane.xlu1 %133 }
 0x337   :  { %v128_v54 = vsub.f32 %v124_v52, %v127_v53  ;;  %v135_v56 = vsub.f32 %v280_v4, %v134_v55 }
 0x339   :  { %258 = vrsqrt.f32 %v128_v54 }
 0x346   :  { %v259_v57 = vpop.eup %258 }
 0x347   :  { %v136_v58 = vmul.f32 %v259_v57, %v135_v56 }
 0x349   :  { %v139_v59 = vsel %vm138_vm12, %v136_v58, 0.0 }
 0x34a   :  { %v140_v60 = vadd.f32 %v139_v59, %v118_v48 }
 0x34c   :  { %141 = vst [vmem:[#allocation1] sm:$0xff] %v140_v60 }
 0x353   :  { %v144_v61 = vld [vmem:[#allocation1 + $0x5] ss:$0 sm:$0xff] }
 0x354   :  { %v154_v62 = vmul.f32 %v144_v61, %v140_v60  ;;  %v147_v63 = vmul.f32 %v144_v61, %v144_v61 }
 0x356   :  { %155 = vadd.xlane.f32.xlu1 %v154_v62  ;;  %148 = vadd.xlane.f32.xlu0 %v147_v63 }
 0x3df   :  { %v149_v1 = vpop.xlane.xlu0 %148  ;;  %v156_v3 = vpop.xlane.xlu1 %155 }
 0x3e0   :  { %v150_v2 = vsub.f32 %v146_v0, %v149_v1  ;;  %v157_v5 = vsub.f32 %v280_v4, %v156_v3 }
 0x3e2   :  { %260 = vrsqrt.f32 %v150_v2 }
 0x3ef   :  { %v261_v6 = vpop.eup %260 }
 0x3f0   :  { %v158_v7 = vmul.f32 %v261_v6, %v157_v5 }
 0x3f2   :  { %v161_v8 = vsel %vm160_vm15, %v158_v7, 0.0 }
 0x3f3   :  { %v162_v9 = vadd.f32 %v161_v8, %v140_v60 }
 0x3f5   :  { %163 = vst [vmem:[#allocation1] sm:$0xff] %v162_v9 }
 0x3fc   :  { %v166_v10 = vld [vmem:[#allocation1 + $0x6] ss:$0 sm:$0xff] }
 0x3fd   :  { %v176_v11 = vmul.f32 %v166_v10, %v162_v9  ;;  %v169_v12 = vmul.f32 %v166_v10, %v166_v10 }
 0x3ff   :  { %177 = vadd.xlane.f32.xlu1 %v176_v11  ;;  %170 = vadd.xlane.f32.xlu0 %v169_v12 }
 0x488   :  { %v171_v14 = vpop.xlane.xlu0 %170  ;;  %v178_v16 = vpop.xlane.xlu1 %177 }
 0x489   :  { %v172_v15 = vsub.f32 %v168_v13, %v171_v14  ;;  %v179_v17 = vsub.f32 %v280_v4, %v178_v16 }
 0x48b   :  { %262 = vrsqrt.f32 %v172_v15 }
 0x498   :  { %v263_v18 = vpop.eup %262 }
 0x499   :  { %v180_v19 = vmul.f32 %v263_v18, %v179_v17 }
 0x49b   :  { %v183_v20 = vsel %vm182_vm2, %v180_v19, 0.0 }
 0x49c   :  { %v184_v21 = vadd.f32 %v183_v20, %v162_v9 }
 0x49e   :  { %185 = vst [vmem:[#allocation1] sm:$0xff] %v184_v21 }
 0x4a5   :  { %v188_v22 = vld [vmem:[#allocation1 + $0x7] ss:$0 sm:$0xff] }
 0x4a6   :  { %v198_v23 = vmul.f32 %v188_v22, %v184_v21  ;;  %v191_v24 = vmul.f32 %v188_v22, %v188_v22 }
 0x4a8   :  { %199 = vadd.xlane.f32.xlu1 %v198_v23  ;;  %192 = vadd.xlane.f32.xlu0 %v191_v24 }
 0x531   :  { %v193_v26 = vpop.xlane.xlu0 %192  ;;  %v200_v28 = vpop.xlane.xlu1 %199 }
 0x532   :  { %v194_v27 = vsub.f32 %v190_v25, %v193_v26  ;;  %v201_v29 = vsub.f32 %v280_v4, %v200_v28 }
 0x534   :  { %264 = vrsqrt.f32 %v194_v27 }
 0x541   :  { %v265_v30 = vpop.eup %264 }
 0x542   :  { %v202_v31 = vmul.f32 %v265_v30, %v201_v29 }
 0x544   :  { %v205_v32 = vsel %vm204_vm5, %v202_v31, 0.0 }
 0x545   :  { %v206_v33 = vadd.f32 %v205_v32, %v184_v21 }
 0x547   :  { %207 = vst [vmem:[#allocation1] sm:$0xff] %v206_v33  ;;  %237 = vst [vmem:[%s295_s1] sm:$0xff] %v206_v33 }

// kernel: custom-call.60
= control target key start
LH: loop header
LB: loop body
LE: loop exit
PB: predicated region body
PF: predicated region fallthrough
CT: control target
= control target key end

     0   :  { %v35_v0 = vlaneseq  ;;  %v182_v9 = vmov -1.0   ;;  %s217_s0 = inlined_call_operand.vmem [shape: f32[1,8,8], index: 0, kind: input, shape index: {}]   ;;  %s218_s1 = inlined_call_operand.vmem [shape: f32[1,8,8], index: 1, kind: output, shape index: {}]  }
   0x1   :  { %v30_v1 = vld [vmem:[%s217_s0] sm:$0xff] }
   0x2   :  { %v196_v2 = vand.u32 127, %v35_v0  ;;  %v39_v3 = vshrl.u32 %v35_v0, 7 }
   0x4   :  { %vm37_vm0 = vcmp.lt.s32.totalorder %v196_v2, 8  ;;  %vm41_vm1 = vcmp.eq.s32.totalorder %v39_v3, %v196_v2  ;;  %vm46_vm2 = vcmp.ge.s32.totalorder %v39_v3, %v196_v2  ;;  %vm60_vm4 = vcmp.eq.s32.totalorder %v196_v2, 0 }
   0x5   :  { %v43_v4 = vsel %vm41_vm1, %v30_v1, 0.0  ;;  %vm47_vm3 = vmand %vm46_vm2, %vm37_vm0  ;;  %vm57_vm5 = vcmp.eq.s32.totalorder %v196_v2, %v39_v3  ;;  %v61_v10 = vsel %vm60_vm4, 1.0, %v182_v9  ;;  %vm68_vm6 = vcmp.eq.s32.totalorder %v196_v2, 1 }
   0x6   :  { %v48_v5 = vsel %vm47_vm3, %v30_v1, 0.0  ;;  %44 = vadd.xlane.f32.xlu0 %v43_v4  ;;  %v62_v11 = vsel %vm57_vm5, %v61_v10, 0.0  ;;  %vm78_vm7 = vcmp.eq.s32.totalorder %v196_v2, 2  ;;  %vm88_vm8 = vcmp.eq.s32.totalorder %v196_v2, 3 }
   0x7   :  { %vm98_vm9 = vcmp.eq.s32.totalorder %v196_v2, 4  ;;  %vm108_vm10 = vcmp.eq.s32.totalorder %v196_v2, 5  ;;  %vm118_vm11 = vcmp.eq.s32.totalorder %v196_v2, 6  ;;  %vm128_vm12 = vcmp.eq.s32.totalorder %v196_v2, 7 }
  0x8f   :  { %v201_v6 = vpop.xlane.xlu0 %44 }
  0x90   :  { %180 = vrcp.f32 %v201_v6  ;;  %vm135_vm13 = vweird.f32 %v201_v6 }
  0x9d   :  { %v181_v7 = vpop.eup %180 }
  0x9e   :  { %v50_v8 = vmul.f32 %v181_v7, %v48_v5 }
  0xa0   :  { %51 = vst [vmem:[#allocation2] sm:$0xff] %v50_v8 }
  0xa7   :  { %v64_v12 = vld [vmem:[#allocation2 + $0x1] ss:$0 sm:$0xff]  ;;  %v74_v15 = vld [vmem:[#allocation2 + $0x2] ss:$0 sm:$0xff]  ;;  %v84_v20 = vld [vmem:[#allocation2 + $0x3] ss:$0 sm:$0xff] }
  0xa8   :  { %v65_v13 = vxor.u32 2147483648, %v64_v12  ;;  %v75_v17 = vxor.u32 2147483648, %v74_v15  ;;  %v85_v22 = vxor.u32 2147483648, %v84_v20  ;;  %v94_v25 = vld [vmem:[#allocation2 + $0x4] ss:$0 sm:$0xff] }
  0xa9   :  { %v95_v27 = vxor.u32 2147483648, %v94_v25  ;;  %v104_v30 = vld [vmem:[#allocation2 + $0x5] ss:$0 sm:$0xff]  ;;  %v114_v35 = vld [vmem:[#allocation2 + $0x6] ss:$0 sm:$0xff] }
  0xaa   :  { %v69_v14 = vmul.f32 %v65_v13, %v62_v11  ;;  %v105_v32 = vxor.u32 2147483648, %v104_v30  ;;  %v115_v37 = vxor.u32 2147483648, %v114_v35  ;;  %v124_v40 = vld [vmem:[#allocation2 + $0x7] ss:$0 sm:$0xff] }
  0xab   :  { %v125_v42 = vxor.u32 2147483648, %v124_v40 }
  0xac   :  { %70 = vadd.xlane.f32.xlu0 %v69_v14 }
 0x135   :  { %v71_v16 = vpop.xlane.xlu0 %70 }
 0x136   :  { %v72_v18 = vsel %vm68_vm6, %v71_v16, %v62_v11 }
 0x137   :  { %v79_v19 = vmul.f32 %v75_v17, %v72_v18 }
 0x139   :  { %80 = vadd.xlane.f32.xlu1 %v79_v19 }
 0x1c2   :  { %v81_v21 = vpop.xlane.xlu1 %80 }
 0x1c3   :  { %v82_v23 = vsel %vm78_vm7, %v81_v21, %v72_v18 }
 0x1c4   :  { %v89_v24 = vmul.f32 %v85_v22, %v82_v23 }
 0x1c6   :  { %90 = vadd.xlane.f32.xlu1 %v89_v24 }
 0x24f   :  { %v91_v26 = vpop.xlane.xlu1 %90 }
 0x250   :  { %v92_v28 = vsel %vm88_vm8, %v91_v26, %v82_v23 }
 0x251   :  { %v99_v29 = vmul.f32 %v95_v27, %v92_v28 }
 0x253   :  { %100 = vadd.xlane.f32.xlu0 %v99_v29 }
 0x2dc   :  { %v101_v31 = vpop.xlane.xlu0 %100 }
 0x2dd   :  { %v102_v33 = vsel %vm98_vm9, %v101_v31, %v92_v28 }
 0x2de   :  { %v109_v34 = vmul.f32 %v105_v32, %v102_v33 }
 0x2e0   :  { %110 = vadd.xlane.f32.xlu1 %v109_v34 }
 0x369   :  { %v111_v36 = vpop.xlane.xlu1 %110 }
 0x36a   :  { %v112_v38 = vsel %vm108_vm10, %v111_v36, %v102_v33 }
 0x36b   :  { %v119_v39 = vmul.f32 %v115_v37, %v112_v38 }
 0x36d   :  { %120 = vadd.xlane.f32.xlu0 %v119_v39 }
 0x3f6   :  { %v121_v41 = vpop.xlane.xlu0 %120 }
 0x3f7   :  { %v122_v43 = vsel %vm118_vm11, %v121_v41, %v112_v38 }
 0x3f8   :  { %v129_v44 = vmul.f32 %v125_v42, %v122_v43 }
 0x3fa   :  { %130 = vadd.xlane.f32.xlu1 %v129_v44 }
 0x483   :  { %v131_v45 = vpop.xlane.xlu1 %130 }
 0x484   :  { %v132_v46 = vsel %vm128_vm12, %v131_v45, %v122_v43 }
 0x485   :  { %v134_v47 = vmul.f32 %v181_v7, %v132_v46 }
 0x487   :  { %v136_v48 = vsel %vm135_vm13, %v132_v46, %v134_v47 }
 0x488   :  { %167 = vst [vmem:[%s218_s1] sm:$0xff] %v136_v48 }

// kernel: _limg_forward.1
= control target key start
LH: loop header
LB: loop body
LE: loop exit
PB: predicated region body
PF: predicated region fallthrough
CT: control target
= control target key end

     0   :  { %v11_v0 = vlaneseq  ;;  %v202_v3 = vmov 0.0   ;;  %vm203_vm0 = vmmov 0   ;;  %s204_s13 = smov 127   ;;  %vm95_vm2 = vcmask 1039360   ;;  %s232_s0 = inlined_call_operand.vmem [shape: f32[8,256], index: 0, kind: input, shape index: {}]   ;;  %s233_s1 = inlined_call_operand.vmem [shape: f32[8,8], index: 1, kind: output, shape index: {0}]   ;;  %s234_s2 = inlined_call_operand.vmem [shape: f32[8,8], index: 2, kind: output, shape index: {1}]  }
   0x1   :  { %v15_v1 = vld [vmem:[%s232_s0] sm:$0xff]  ;;  %v16_v2 = vld [vmem:[%s232_s0 + $0x8] sm:$0xff]  ;;  %184 = vmatprep.subr.mxu0 %v202_v3  ;;  %189 = vmatprep.subr.mxu1 %v202_v3  ;;  %vm87_vm3 = vcmask 64512  }
   0x2   :  { %v197_v4 = vpack.i.bf16 %v16_v2, %v15_v1  ;;  %v12_v5 = vand.u32 127, %v11_v0  ;;  %186 = vmatprep.mubr.msk.f32.mxu0 %vm203_vm0, %v202_v3  ;;  %191 = vmatprep.mubr.msk.f32.mxu1 %vm203_vm0, %v202_v3 }
   0x4   :  { %198 = vrot.lane.b32.xlu0 %v197_v4, %s204_s13  ;;  %vm13_vm1 = vcmp.lt.s32.totalorder %v12_v5, 15 }
   0x5   :  { %185 = vmatpush3.xpose.msk.msra.mxu0 %vm13_vm1, %v15_v1  ;;  %190 = vmatpush3.xpose.msk.msra.mxu1 %vm13_vm1, %v15_v1 }
   0x8   :  { %187 = vmatmul.mubr.msk.f32.vlgmr.msra.gmra.mxu0 %vm13_vm1, %v15_v1 }
  0x76   :  { %v199_v6 = vpop.permute.xlu0 %198 }
  0x77   :  { %v201_v7 = vunpack.i.h.bf16 %v199_v6  ;;  %v200_v8 = vunpack.i.l.bf16 %v199_v6 }
  0x79   :  { %v96_v9 = vsel %vm95_vm2, %v200_v8, %v201_v7 }
  0x7a   :  { %192 = vmatmul.mubr.f32.vlgmr.msra.gmra.mxu1 %v96_v9 }
  0xc8   :  { %v83_v10 = vpop.f32.mrf.mxu0 }
  0xc9   :  { %88 = vst.msk [vmem:[%s233_s1] sm:$0xff] %vm87_vm3, %v83_v10 }
  0xca   :  { %v188_v11 = vpop.f32.mrf.mxu0 }
 0x13a   :  { %v164_v12 = vpop.f32.mrf.mxu1 }
 0x13b   :  { %168 = vst.msk [vmem:[%s234_s2] sm:$0xff] %vm87_vm3, %v164_v12 }
 0x13c   :  { %v193_v13 = vpop.f32.mrf.mxu1 }

// kernel: custom-call.23
= control target key start
LH: loop header
LB: loop body
LE: loop exit
PB: predicated region body
PF: predicated region fallthrough
CT: control target
= control target key end

     0   :  { %v300_v3 = vlaneseq  ;;  %v1769_v5 = vmov 0.0   ;;  %s289_s17 = smov [#allocation22]  ;;  %s292_s18 = smov [#allocation23]  ;;  %s2052_s0 = inlined_call_operand.vmem [shape: f32[4,4], index: 0, kind: input, shape index: {}]   ;;  %s2053_s1 = inlined_call_operand.vmem [shape: f32[4,4], index: 1, kind: input, shape index: {}]   ;;  %s2054_s2 = inlined_call_operand.vmem [shape: f32[4,4], index: 2, kind: input, shape index: {}]   ;;  %s2055_s3 = inlined_call_operand.vmem [shape: f32[4,4], index: 3, kind: input, shape index: {}]   ;;  %s2056_s4 = inlined_call_operand.vmem [shape: f32[4], index: 4, kind: output, shape index: {0}]   ;;  %s2057_s5 = inlined_call_operand.vmem [shape: f32[4], index: 5, kind: output, shape index: {1}]   ;;  %s2058_s6 = inlined_call_operand.vmem [shape: f32[4,4], index: 6, kind: output, shape index: {2}]   ;;  %s2059_s7 = inlined_call_operand.vmem [shape: f32[4,4], index: 7, kind: output, shape index: {3}]   ;;  %s2060_s8 = inlined_call_operand.vmem [shape: f32[4,4], index: 8, kind: output, shape index: {4}]   ;;  %s2061_s9 = inlined_call_operand.vmem [shape: f32[4,4], index: 9, kind: output, shape index: {5}]  }
   0x1   :  { %v72_v0 = vld [vmem:[%s2052_s0] sm:$0xf]  ;;  %295 = vst [vmem:[#allocation12] sm:$0xff] %v1769_v5  ;;  %296 = vst [vmem:[#allocation14] sm:$0xff] %v1769_v5  ;;  %s299_s0 = smov [#allocation12]  ;;  %s1467_s19 = smov [#allocation20] }
   0x2   :  { %v135_v1 = vld [vmem:[%s2053_s1] sm:$0xf]  ;;  %73 = vst [vmem:[#allocation1] sm:$0xf] %v72_v0  ;;  %297 = vst [vmem:[#allocation16] sm:$0xff] %v1769_v5  ;;  %v1834_v6 = vand.u32 127, %v300_v3 }
   0x3   :  { %v198_v2 = vld [vmem:[%s2054_s2] sm:$0xf]  ;;  %136 = vst [vmem:[#allocation3] sm:$0xf] %v135_v1  ;;  %298 = vst [vmem:[#allocation18] sm:$0xff] %v1769_v5  ;;  %v1836_v7 = vshrl.u32 %v300_v3, 7 }
   0x4   :  { %199 = vst [vmem:[#allocation5] sm:$0xf] %v198_v2  ;;  %v261_v4 = vld [vmem:[%s2055_s3] sm:$0xf]  ;;  %v302_v6 = vmov %v1834_v6  ;;  %s312_s1 = smov [#allocation18]  ;;  %s283_s2 = smov [#allocation20] }
   0x5   :  { %262 = vst [vmem:[#allocation7] sm:$0xf] %v261_v4  ;;  %v305_v7 = vmov %v1836_v7  ;;  %v315_v6 = vmov %v1834_v6  ;;  %s286_s3 = smov [#allocation21]  ;;  %vm1471_vm2 = vcmp.lt.s32.totalorder %v1834_v6, 4  ;;  %s1484_s20 = smov [#allocation21] }
   0x6   :  { %v318_v7 = vmov %v1836_v7  ;;  %vm309_vm0 = vcmp.eq.s32.totalorder %v305_v7, %v302_v6  ;;  %s1501_s21 = smov [#allocation22]  ;;  %s1518_s22 = smov [#allocation23] }
   0x7   :  { %vm322_vm1 = vcmp.eq.s32.totalorder %v318_v7, %v315_v6  ;;  %v1463_v6 = vmov %v1834_v6  ;;  %v1466_v7 = vmov %v1836_v7 }
   0x8   :  { %v306_v12 = vld [vmem:[%s299_s0] sm:$0xf]  ;;  %vm1476_vm3 = vcmp.eq.s32.totalorder %v1466_v7, %v1463_v6  ;;  %v1514_v6 = vmov %v1834_v6  ;;  %v1483_v7 = vmov %v1836_v7 }
   0x9   :  { %v266_v8 = vld [vmem:[#allocation1] sm:$0xf]  ;;  %v310_v14 = vsel %vm309_vm0, 1.0, %v306_v12  ;;  %v1480_v6 = vmov %v1834_v6  ;;  %v1517_v7 = vmov %v1836_v7 }
   0xa   :  { %v271_v9 = vld [vmem:[#allocation3] sm:$0xf]  ;;  %267 = vst [vmem:[#allocation0] sm:$0xf] %v266_v8  ;;  %v319_v13 = vld [vmem:[%s312_s1] sm:$0xf]  ;;  %v1497_v6 = vmov %v1834_v6  ;;  %v1500_v7 = vmov %v1836_v7  ;;  %vm1527_vm4 = vcmp.eq.s32.totalorder %v1517_v7, %v1514_v6 }
   0xb   :  { %v276_v10 = vld [vmem:[#allocation5] sm:$0xf]  ;;  %272 = vst [vmem:[#allocation2] sm:$0xf] %v271_v9  ;;  %v323_v15 = vsel %vm322_vm1, 1.0, %v319_v13  ;;  %311 = vst [vmem:[%s299_s0] sm:$0xf] %v310_v14 }
   0xc   :  { %277 = vst [vmem:[#allocation4] sm:$0xf] %v276_v10  ;;  %v281_v11 = vld [vmem:[#allocation7] sm:$0xf]  ;;  %324 = vst [vmem:[%s312_s1] sm:$0xf] %v323_v15 }
   0xd   :  { %282 = vst [vmem:[#allocation6] sm:$0xf] %v281_v11 }
  0x11   :  { %v284_v16 = vld [vmem:[#allocation0] sm:$0xff] }
  0x12   :  { %v287_v17 = vld [vmem:[#allocation2] sm:$0xff]  ;;  %285 = vst [vmem:[%s283_s2] sm:$0xff] %v284_v16 }
  0x13   :  { %v290_v18 = vld [vmem:[#allocation4] sm:$0xff]  ;;  %288 = vst [vmem:[%s286_s3] sm:$0xff] %v287_v17 }
  0x14   :  { %291 = vst [vmem:[%s289_s17] sm:$0xff] %v290_v18  ;;  %v293_v19 = vld [vmem:[#allocation6] sm:$0xff] }
  0x15   :  { %294 = vst [vmem:[%s292_s18] sm:$0xff] %v293_v19 }
  0x19   :  { %v1473_v20 = vld [vmem:[%s1467_s19] sm:$0xf] }
  0x1a   :  { %v1490_v21 = vld [vmem:[%s1484_s20] sm:$0xf]  ;;  %v1474_v22 = vsel %vm1471_vm2, %v1473_v20, 0.0 }
  0x1b   :  { %v1491_v23 = vsel %vm1471_vm2, %v1490_v21, 0.0  ;;  %v1507_v24 = vld [vmem:[%s1501_s21] sm:$0xf]  ;;  %v1475_v26 = vmul.f32 %v1474_v22, %v1474_v22 }
  0x1c   :  { %v1524_v25 = vld [vmem:[%s1518_s22] sm:$0xf]  ;;  %v1492_v27 = vmul.f32 %v1491_v23, %v1491_v23  ;;  %v1508_v28 = vsel %vm1471_vm2, %v1507_v24, 0.0 }
  0x1d   :  { %v1525_v29 = vsel %vm1471_vm2, %v1524_v25, 0.0  ;;  %v1509_v30 = vmul.f32 %v1508_v28, %v1508_v28  ;;  %v1477_v33 = vsel %vm1476_vm3, 0.0, %v1475_v26 }
  0x1e   :  { %v1494_v31 = vadd.f32 %v1492_v27, %v1475_v26  ;;  %v1526_v32 = vmul.f32 %v1525_v29, %v1525_v29  ;;  %v1493_v34 = vadd.f32 %v1492_v27, %v1477_v33 }
  0x20   :  { %v1511_v35 = vadd.f32 %v1509_v30, %v1494_v31  ;;  %v1510_v36 = vadd.f32 %v1509_v30, %v1493_v34  ;;  %v1528_v37 = vsel %vm1527_vm4, 0.0, %v1526_v32 }
  0x22   :  { %v1530_v38 = vadd.f32 %v1526_v32, %v1511_v35  ;;  %v1529_v39 = vadd.f32 %v1528_v37, %v1510_v36 }
  0x24   :  { %1531 = vadd.xlane.f32.xlu0 %v1530_v38 }
  0x28   :  { %1539 = vadd.xlane.f32.xlu0 %v1529_v39 }
  0xad   :  { %v1532_v40 = vpop.xlane.xlu0 %1531 }
  0xae   :  { %v1533_v41 = vrot.slane %v1532_v40, 4 }
  0xb0   :  { %v1534_v42 = vadd.f32 %v1533_v41, %v1532_v40 }
  0xb1   :  { %v1540_v43 = vpop.xlane.xlu0 %1539 }
  0xb2   :  { %v1535_v44 = vrot.slane %v1534_v42, 2  ;;  %v1541_v45 = vrot.slane %v1540_v43, 4 }
  0xb4   :  { %v1542_v46 = vadd.f32 %v1541_v45, %v1540_v43  ;;  %v1536_v47 = vadd.f32 %v1535_v44, %v1534_v42 }
  0xb6   :  { %v1543_v48 = vrot.slane %v1542_v46, 2  ;;  %v1537_v50 = vrot.slane %v1536_v47, 1 }
  0xb8   :  { %v1544_v49 = vadd.f32 %v1543_v48, %v1542_v46  ;;  %v1538_v53 = vadd.f32 %v1537_v50, %v1536_v47 }
  0xba   :  { %v1545_v51 = vrot.slane %v1544_v49, 1 }
  0xbc   :  { %v1546_v52 = vadd.f32 %v1545_v51, %v1544_v49 }
  0xbe   :  { %1718 = vpush %v1546_v52 }
  0xbf   :  { %1720 = vpush %v1538_v53 }
  0xef   :  { %s1719_s23 = spop %1718 }
  0xf0   :  { %s1721_s24 = spop %1720 }
  0xf1   :  { %s1549_s25 = smul.f32 1e-10, %s1721_s24 }
  0xf3   :  { %p1550_p0 = scmp.le.f32.partialorder %s1719_s23, %s1549_s25 }
  0xf4   :  { %s1860_s26 = smov (!%p1550_p0), 0  }
  0xf5   :  { %1553 = sbr.rel (%p1550_p0) target bundleno = 927 (0x39f), region = 440 }
  0xfa LB: > { %s1865_s27 = smov 0   ;;  %s1763_s26 = sphi %s1860_s26, %s2062_s26  }
  0xfb LB: >> { %s429_s28 = smov [#allocation20]  ;;  %v433_v6 = vmov %v1834_v6  ;;  %v436_v7 = vmov %v1836_v7  ;;  %s449_s29 = smov [#allocation21]  ;;  %vm752_vm14 = vcmp.eq.s32.totalorder %v1836_v7, 0  ;;  %vm764_vm15 = vcmp.eq.s32.totalorder %v1836_v7, 3  ;;  %s1767_s27 = sphi %s1865_s27, %s428_s27  }
  0xfc   : >> { %v453_v6 = vmov %v1834_v6  ;;  %v456_v7 = vmov %v1836_v7  ;;  %v437_v54 = vld [vmem:[%s429_s28] sm:$0xf]  ;;  %vm440_vm5 = vcmp.eq.s32.totalorder %v436_v7, %v433_v6  ;;  %s469_s30 = smov [#allocation23]  ;;  %s430_s10 = smov [#allocation24] }
  0xfd   : >> { %vm460_vm6 = vcmp.eq.s32.totalorder %v456_v7, %v453_v6  ;;  %v473_v6 = vmov %v1834_v6  ;;  %v476_v7 = vmov %v1836_v7  ;;  %v441_v55 = vsel %vm440_vm5, %v437_v54, 0.0  ;;  %v457_v56 = vld [vmem:[%s449_s29] sm:$0xf]  ;;  %s450_s11 = smov [#allocation25]  ;;  %s470_s12 = smov [#allocation26] }
  0xfe   : >> { %vm480_vm7 = vcmp.eq.s32.totalorder %v476_v7, %v473_v6  ;;  %v442_v57 = vrot.slane %v441_v55, 4  ;;  %v461_v58 = vsel %vm460_vm6, %v457_v56, 0.0  ;;  %v477_v59 = vld [vmem:[%s469_s30] sm:$0xf]  ;;  %s493_s13 = smov [#allocation25]  ;;  %s491_s14 = smov [#allocation24]  ;;  %v542_v6 = vmov %v1834_v6 }
  0xff   : >> { %v462_v60 = vrot.slane %v461_v58, 4  ;;  %v481_v61 = vsel %vm480_vm7, %v477_v59, 0.0  ;;  %s495_s15 = smov [#allocation26]  ;;  %s530_s16 = smov [#allocation27]  ;;  %v545_v7 = vmov %v1836_v7  ;;  %v557_v6 = vmov %v1834_v6 }
 0x100   : >> { %v443_v62 = vadd.f32 %v442_v57, %v441_v55  ;;  %v482_v63 = vrot.slane %v481_v61, 4  ;;  %s532_s0 = smov [#allocation28]  ;;  %s489_s1 = smov [#allocation29]  ;;  %v560_v7 = vmov %v1836_v7  ;;  %vm547_vm12 = vcmp.eq.s32.totalorder %v545_v7, %v542_v6 }
 0x101   : >> { %v463_v0 = vadd.f32 %v462_v60, %v461_v58  ;;  %s490_s2 = smov [#allocation30]  ;;  %s534_s1 = smov %s489_s1  ;;  %vm562_vm13 = vcmp.eq.s32.totalorder %v560_v7, %v557_v6  ;;  %v655_v6 = vmov %v1834_v6  ;;  %v658_v7 = vmov %v1836_v7 }
 0x102   : >> { %v444_v1 = vrot.slane %v443_v62, 2  ;;  %v483_v2 = vadd.f32 %v482_v63, %v481_v61  ;;  %s536_s2 = smov %s490_s2  ;;  %s538_s3 = smov [#allocation29]  ;;  %v669_v6 = vmov %v1834_v6  ;;  %v672_v7 = vmov %v1836_v7 }
 0x103   : >> { %v464_v3 = vrot.slane %v463_v0, 2  ;;  %s553_s17 = smov [#allocation30]  ;;  %s551_s18 = smov [#allocation31]  ;;  %vm662_vm0 = vcmp.eq.s32.totalorder %v658_v7, %v655_v6  ;;  %v628_v6 = vmov %v1834_v6  ;;  %v631_v7 = vmov %v1836_v7 }
 0x104   : >> { %v445_v4 = vadd.f32 %v444_v1, %v443_v62  ;;  %v484_v5 = vrot.slane %v483_v2, 2  ;;  %s568_s19 = smov [#allocation31]  ;;  %s1880_s20 = smov [#allocation20]  ;;  %v642_v6 = vmov %v1834_v6  ;;  %v645_v7 = vmov %v1836_v7 }
 0x105   : >> { %v465_v8 = vadd.f32 %v464_v3, %v463_v0  ;;  %s566_s21 = smov [#allocation32]  ;;  %s1882_s22 = smov [#allocation21]  ;;  %v576_v53 = vld [vmem:[%s1880_s20] sm:$0xf]  ;;  %vm677_vm1 = vcmp.eq.s32.totalorder %v672_v7, %v669_v6  ;;  %vm636_vm3 = vcmp.eq.s32.totalorder %v631_v7, %v628_v6  ;;  %vm649_vm4 = vcmp.eq.s32.totalorder %v645_v7, %v642_v6 }
 0x106   : >> { %v446_v9 = vrot.slane %v445_v4, 1  ;;  %v485_v10 = vadd.f32 %v484_v5, %v483_v2  ;;  %s1884_s23 = smov [#allocation22]  ;;  %s1886_s24 = smov [#allocation23]  ;;  %v577_v54 = vld [vmem:[%s1882_s22] sm:$0xf]  ;;  %vm691_vm5 = vcmp.eq.s32.totalorder %v1834_v6, 0 }
 0x107   : >> { %v466_v11 = vrot.slane %v465_v8, 1  ;;  %s1888_s25 = smov [#allocation12]  ;;  %s1890_s28 = smov [#allocation14]  ;;  %v578_v55 = vld [vmem:[%s1884_s23] sm:$0xf]  ;;  %vm695_vm6 = vcmp.eq.s32.totalorder %v1834_v6, 1 }
 0x108   : >> { %v447_v12 = vadd.f32 %v446_v9, %v445_v4  ;;  %v486_v13 = vrot.slane %v485_v10, 1  ;;  %s1892_s29 = smov [#allocation16]  ;;  %s792_s30 = smov [#allocation31]  ;;  %v579_v56 = vld [vmem:[%s1886_s24] sm:$0xf]  ;;  %vm708_vm7 = vcmp.eq.s32.totalorder %v1834_v6, 3 }
 0x109   : >> { %v467_v14 = vadd.f32 %v466_v11, %v465_v8  ;;  %v800_v57 = vld [vmem:[%s1888_s25] sm:$0xf]  ;;  %s428_s27 = sadd.s32 1, %s1767_s27  }
 0x10a   : >> { %448 = vst [vmem:[%s430_s10] sm:$0x1] %v447_v12  ;;  %v487_v15 = vadd.f32 %v486_v13, %v485_v10  ;;  %s1896_s10 = smov [#allocation18]  ;;  %v801_v58 = vld [vmem:[%s1890_s28] sm:$0xf]  ;;  %p425_p1 = scmp.ge.s32.totalorder %s428_s27, 7  }
 0x10b   : >> { %468 = vst [vmem:[%s450_s11] sm:$0x1] %v467_v14  ;;  %v802_v59 = vld [vmem:[%s1892_s29] sm:$0xf]  ;;  %s570_s11 = smov [#allocation32]  ;;  %v329_v6 = vmov (%p425_p1), %v1834_v6  ;;  %v332_v7 = vmov (%p425_p1), %v1836_v7 }
 0x10c   : >> { %488 = vst [vmem:[%s470_s12] sm:$0x1] %v487_v15  ;;  %v803_v61 = vld [vmem:[%s1896_s10] sm:$0xf]  ;;  %s794_s12 = smov [#allocation32]  ;;  %v382_v6 = vmov (%p425_p1), %v1834_v6 }
 0x111   : >> { %v492_v18 = vld [vmem:[%s491_s14] sm:$0xff]  ;;  %s598_s14 = smov [#allocation30] }
 0x112   : >> { %v494_v16 = vld [vmem:[%s493_s13] sm:$0xff]  ;;  %v515_v33 = vand.u32 2147483647, %v492_v18  ;;  %s596_s13 = smov [#allocation29] }
 0x113   : >> { %v498_v17 = vmul.f32 2.0, %v494_v16  ;;  %v496_v19 = vld [vmem:[%s495_s15] sm:$0xff]  ;;  %v516_v36 = vand.u32 2147483647, %v494_v16  ;;  %s1912_s15 = smov [#allocation12] }
 0x114   : >> { %v497_v20 = vsub.f32 %v496_v19, %v492_v18  ;;  %v517_v34 = vand.u32 2147483647, %v496_v19 }
 0x115   : >> { %1745 = vrcp.f32 %v498_v17 }
 0x116   : >> { %v518_v35 = vmin.f32 %v515_v33, %v517_v34 }
 0x118   : >> { %v519_v37 = vmul.f32 1.1920929e-08, %v518_v35 }
 0x11a   : >> { %vm520_vm11 = vcmp.le.f32.partialorder %v516_v36, %v519_v37 }
 0x122   : >> { %v1746_v21 = vpop.eup %1745 }
 0x123   : >> { %v500_v22 = vmul.f32 %v1746_v21, %v497_v20 }
 0x125   : >> { %v502_v23 = vmul.f32 %v500_v22, %v500_v22  ;;  %vm501_vm10 = vcmp.ge.f32.partialorder %v500_v22, 0.0 }
 0x127   : >> { %v503_v24 = vadd.f32 1.0, %v502_v23 }
 0x129   : >> { %1747 = vrsqrt.f32 %v503_v24  ;;  %vm506_vm8 = vcmp.eq.f32.partialorder %v503_v24, inf  ;;  %v509_v26 = vand.u32 2147483648, %v503_v24  ;;  %vm508_vm9 = vcmp.eq.f32.partialorder %v503_v24, 0.0 }
 0x136   : >> { %v1748_v25 = vpop.eup %1747 }
 0x137   : >> { %v505_v27 = vmul.f32 %v1748_v25, %v503_v24 }
 0x139   : >> { %v507_v28 = vsel %vm506_vm8, %v503_v24, %v505_v27  ;;  %vm344_vm8 = vcmp.eq.s32.totalorder (%p425_p1), %v332_v7, %v329_v6  ;;  %v385_v7 = vmov (%p425_p1), %v1836_v7  ;;  %v348_v6 = vmov (%p425_p1), %v1834_v6 }
 0x13a   : >> { %v510_v29 = vsel %vm508_vm9, %v509_v26, %v507_v28  ;;  %v351_v7 = vmov (%p425_p1), %v1836_v7  ;;  %v365_v6 = vmov (%p425_p1), %v1834_v6  ;;  %vm397_vm9 = vcmp.eq.s32.totalorder (%p425_p1), %v385_v7, %v382_v6 }
 0x13b   : >> { %v511_v30 = vxor.u32 2147483648, %v510_v29  ;;  %v368_v7 = vmov (%p425_p1), %v1836_v7 }
 0x13d   : >> { %v512_v31 = vsel %vm501_vm10, %v510_v29, %v511_v30 }
 0x13e   : >> { %v513_v32 = vadd.f32 %v512_v31, %v500_v22 }
 0x140   : >> { %1749 = vrcp.f32 %v513_v32 }
 0x14d   : >> { %v1750_v38 = vpop.eup %1749 }
 0x14e   : >> { %v521_v39 = vsel %vm520_vm11, 0.0, %v1750_v38 }
 0x14f   : >> { %v522_v40 = vmul.f32 %v521_v39, %v521_v39  ;;  %v526_v41 = vmul.f32 %v521_v39, %v494_v16 }
 0x151   : >> { %v523_v42 = vadd.f32 1.0, %v522_v40  ;;  %v527_v43 = vsub.f32 %v492_v18, %v526_v41  ;;  %v529_v44 = vadd.f32 %v526_v41, %v496_v19 }
 0x153   : >> { %1751 = vrsqrt.f32 %v523_v42  ;;  %531 = vst [vmem:[%s530_s16] sm:$0xff] %v527_v43  ;;  %533 = vst [vmem:[%s532_s0] sm:$0xff] %v529_v44  ;;  %s1914_s16 = smov [#allocation22]  ;;  %s1916_s0 = smov [#allocation23] }
 0x160   : >> { %v1752_v45 = vpop.eup %1751 }
 0x161   : >> { %535 = vst [vmem:[%s534_s1] sm:$0xff] %v1752_v45  ;;  %v525_v46 = vmul.f32 %v1752_v45, %v521_v39  ;;  %s1918_s1 = smov [#allocation20] }
 0x163   : >> { %537 = vst [vmem:[%s536_s2] sm:$0xff] %v525_v46  ;;  %s1920_s2 = smov [#allocation16] }
 0x168   : >> { %v539_v47 = vld [vmem:[%s538_s3] ss:$0 sm:$0xff]  ;;  %s1922_s3 = smov [#allocation14] }
 0x169   : >> { %v548_v48 = vsel %vm547_vm12, %v539_v47, 0.0  ;;  %v597_v27 = vld [vmem:[%s596_s13] ss:$0 sm:$0xff]  ;;  %s768_s13 = smov [#allocation21] }
 0x16a   : >> { %549 = vadd.xlane.f32.xlu0 %v548_v48  ;;  %v554_v49 = vld [vmem:[%s553_s17] ss:$0 sm:$0xff]  ;;  %s1926_s17 = smov [#allocation18] }
 0x16b   : >> { %v563_v50 = vsel %vm562_vm13, %v554_v49, 0.0  ;;  %v599_v28 = vld [vmem:[%s598_s14] ss:$0 sm:$0xff]  ;;  %s745_s14 = smov [#allocation22] }
 0x16e   : >> { %564 = vadd.xlane.f32.xlu0 %v563_v50 }
 0x1f3   : >> { %v550_v51 = vpop.xlane.xlu0 %549 }
 0x1f4   : >> { %552 = vst [vmem:[%s551_s18] sm:$0xff] %v550_v51  ;;  %s1928_s18 = smov [#allocation21] }
 0x1f7   : >> { %v565_v52 = vpop.xlane.xlu0 %564 }
 0x1f8   : >> { %567 = vst [vmem:[%s566_s21] sm:$0xff] %v565_v52  ;;  %s665_s21 = smov [#allocation23] }
 0x1fb   : >> { %v569_v60 = vld [vmem:[%s568_s19] sm:$0xff]  ;;  %s666_s19 = smov [#allocation28] }
 0x1fc   : >> { %v793_v62 = vld [vmem:[%s792_s30] sm:$0xff]  ;;  %v580_v63 = vmul.f32 %v576_v53, %v569_v60  ;;  %v583_v0 = vmul.f32 %v577_v54, %v569_v60  ;;  %v587_v1 = vmul.f32 %v578_v55, %v569_v60  ;;  %v590_v2 = vmul.f32 %v579_v56, %v569_v60  ;;  %s681_s30 = smov [#allocation21] }
 0x1fd   : >> { %v804_v3 = vmul.f32 %v800_v57, %v793_v62  ;;  %v807_v4 = vmul.f32 %v801_v58, %v793_v62  ;;  %v811_v5 = vmul.f32 %v802_v59, %v793_v62  ;;  %v814_v8 = vmul.f32 %v803_v61, %v793_v62 }
 0x1ff   : >> { %v571_v9 = vld [vmem:[%s570_s11] sm:$0xff]  ;;  %s1973_s11 = smov [#allocation23] }
 0x200   : >> { %v795_v10 = vld [vmem:[%s794_s12] sm:$0xff]  ;;  %v581_v11 = vmul.f32 %v578_v55, %v571_v9  ;;  %v584_v12 = vmul.f32 %v579_v56, %v571_v9  ;;  %v586_v13 = vmul.f32 %v576_v53, %v571_v9  ;;  %v589_v14 = vmul.f32 %v577_v54, %v571_v9  ;;  %s744_s12 = smov [#allocation20] }
 0x201   : >> { %v805_v15 = vmul.f32 %v802_v59, %v795_v10  ;;  %v808_v16 = vmul.f32 %v803_v61, %v795_v10  ;;  %v810_v17 = vmul.f32 %v800_v57, %v795_v10  ;;  %v813_v18 = vmul.f32 %v801_v58, %v795_v10  ;;  %v673_v59 = vld [vmem:[%s666_s19] ss:$0 sm:$0xff] }
 0x202   : >> { %v582_v19 = vsub.f32 %v580_v63, %v581_v11  ;;  %v585_v20 = vsub.f32 %v583_v0, %v584_v12  ;;  %v588_v21 = vadd.f32 %v587_v1, %v586_v13  ;;  %v591_v22 = vadd.f32 %v590_v2, %v589_v14 }
 0x203   : >> { %v806_v23 = vsub.f32 %v804_v3, %v805_v15  ;;  %v809_v24 = vsub.f32 %v807_v4, %v808_v16  ;;  %v812_v25 = vadd.f32 %v811_v5, %v810_v17  ;;  %v815_v26 = vadd.f32 %v814_v8, %v813_v18 }
 0x204   : >> { %593 = vst [vmem:[%s1882_s22] sm:$0xf] %v585_v20  ;;  %595 = vst [vmem:[%s1886_s24] sm:$0xf] %v591_v22  ;;  %s625_s22 = smov [#allocation27]  ;;  %s639_s24 = smov [#allocation21] }
 0x205   : >> { %592 = vst [vmem:[%s1880_s20] sm:$0xf] %v582_v19  ;;  %594 = vst [vmem:[%s1884_s23] sm:$0xf] %v588_v21  ;;  %s652_s20 = smov [#allocation22]  ;;  %s624_s23 = smov [#allocation20]  ;;  %v632_v63 = vld [vmem:[%s625_s22] ss:$0 sm:$0xff] }
 0x206   : >> { %816 = vst [vmem:[%s1888_s25] sm:$0xf] %v806_v23  ;;  %817 = vst [vmem:[%s1890_s28] sm:$0xf] %v809_v24  ;;  %s1970_s25 = smov [#allocation22]  ;;  %s1770_s28 = smov 1  }
 0x207   : >> { %818 = vst [vmem:[%s1892_s29] sm:$0xf] %v812_v25  ;;  %819 = vst [vmem:[%s1896_s10] sm:$0xf] %v815_v26  ;;  %s680_s29 = smov [#allocation20]  ;;  %s1771_s10 = smov 127  }
 0x20b   : >> { %v607_v30 = vld [vmem:[%s1916_s0] sm:$0xf] }
 0x20c   : >> { %v606_v29 = vld [vmem:[%s1914_s16] sm:$0xf]  ;;  %v615_v36 = vmul.f32 %v607_v30, %v599_v28  ;;  %v618_v42 = vmul.f32 %v607_v30, %v597_v27 }
 0x20d   : >> { %v604_v31 = vld [vmem:[%s1918_s1] sm:$0xf]  ;;  %v614_v35 = vmul.f32 %v606_v29, %v597_v27  ;;  %v617_v37 = vmul.f32 %v606_v29, %v599_v28 }
 0x20e   : >> { %v822_v32 = vld [vmem:[%s1912_s15] ss:$0 sm:$0xff]  ;;  %v1693_v34 = vld [vmem:[%s1912_s15 + $0x3] ss:$0 sm:$0xff]  ;;  %v608_v48 = vmul.f32 %v604_v31, %v597_v27  ;;  %v611_v49 = vmul.f32 %v604_v31, %v599_v28 }
 0x20f   : >> { %v1692_v33 = vld [vmem:[%s1912_s15 - $0x1] sm:$0xe]  ;;  %v1697_v45 = vld [vmem:[%s1922_s3 + $0x3] ss:$0 sm:$0xff]  ;;  %v616_v47 = vsub.f32 %v614_v35, %v615_v36  ;;  %v619_v53 = vadd.f32 %v618_v42, %v617_v37 }
 0x210   : >> { %v829_v38 = vsel %vm752_vm14, %v822_v32, %v1692_v33  ;;  %v833_v39 = vld [vmem:[%s1920_s2] ss:$0 sm:$0xff]  ;;  %v1695_v40 = vld [vmem:[%s1920_s2 + $0x1] sm:$0x7] }
 0x211   : >> { %v846_v41 = vld [vmem:[%s1922_s3] ss:$0 sm:$0xff]  ;;  %832 = vst [vmem:[%s1912_s15] sm:$0xf] %v829_v38  ;;  %v841_v43 = vsel %vm764_vm15, %v1693_v34, %v1695_v40  ;;  %v1699_v51 = vld [vmem:[%s1926_s17 + $0x1] sm:$0x7]  ;;  %622 = vst [vmem:[%s1914_s16] sm:$0xf] %v616_v47 }
 0x212   : >> { %v1696_v44 = vld [vmem:[%s1922_s3 - $0x1] sm:$0xe]  ;;  %1694 = vst [vmem:[%s1912_s15 + $0x1] sm:$0x1] %v833_v39  ;;  %843 = vst [vmem:[%s1920_s2] sm:$0xf] %v841_v43  ;;  %v865_v54 = vsel %vm764_vm15, %v1697_v45, %v1699_v51  ;;  %s769_s15 = smov [#allocation23] }
 0x213   : >> { %v857_v46 = vld [vmem:[%s1926_s17] ss:$0 sm:$0xff]  ;;  %v853_v50 = vsel %vm752_vm14, %v846_v41, %v1696_v44  ;;  %623 = vst [vmem:[%s1916_s0] sm:$0xf] %v619_v53  ;;  %s868_s16 = sadd.s32 (%p425_p1), 1, %s1763_s26   ;;  %s333_s0 = smov (%p425_p1), [#allocation20] }
 0x214   : >> { %v605_v52 = vld [vmem:[%s1928_s18] sm:$0xf]  ;;  %856 = vst [vmem:[%s1922_s3] sm:$0xf] %v853_v50  ;;  %867 = vst [vmem:[%s1926_s17] sm:$0xf] %v865_v54  ;;  %s369_s2 = smov (%p425_p1), [#allocation22]  ;;  %p421_p2 = scmp.ge.s32.totalorder (%p425_p1), %s868_s16, 15 }
 0x215   : >> { %v609_v55 = vmul.f32 %v605_v52, %v599_v28  ;;  %v612_v56 = vmul.f32 %v605_v52, %v597_v27  ;;  %1698 = vst [vmem:[%s1922_s3 + $0x1] sm:$0x1] %v857_v46  ;;  %s386_s3 = smov (%p425_p1), [#allocation23]  ;;  %s2062_s26 = smov (%p425_p1), %s868_s16 }
 0x217   : >> { %v610_v57 = vsub.f32 %v608_v48, %v609_v55  ;;  %v613_v58 = vadd.f32 %v612_v56, %v611_v49 }
 0x218   : >> { %v659_v60 = vld [vmem:[%s652_s20] sm:$0xf] }
 0x219   : >> { %620 = vst [vmem:[%s1918_s1] sm:$0xf] %v610_v57  ;;  %621 = vst [vmem:[%s1928_s18] sm:$0xf] %v613_v58  ;;  %v663_v61 = vsel %vm662_vm0, 0.0, %v659_v60  ;;  %s352_s1 = smov (%p425_p1), [#allocation21] }
 0x21a   : >> { %v674_v62 = vld [vmem:[%s665_s21] sm:$0xf]  ;;  %664 = vst [vmem:[%s652_s20] sm:$0xf] %v663_v61 }
 0x21b   : >> { %v678_v0 = vsel %vm677_vm1, %v673_v59, %v674_v62 }
 0x21c   : >> { %679 = vst [vmem:[%s665_s21] sm:$0xf] %v678_v0 }
 0x220   : >> { %v633_v1 = vld [vmem:[%s624_s23] sm:$0xf] }
 0x221   : >> { %v646_v2 = vld [vmem:[%s639_s24] sm:$0xf]  ;;  %v637_v3 = vsel %vm636_vm3, %v632_v63, %v633_v1 }
 0x222   : >> { %v650_v4 = vsel %vm649_vm4, 0.0, %v646_v2  ;;  %638 = vst [vmem:[%s624_s23] sm:$0xf] %v637_v3  ;;  %v718_v5 = vld [vmem:[%s1970_s25] sm:$0xf] }
 0x223   : >> { %651 = vst [vmem:[%s639_s24] sm:$0xf] %v650_v4  ;;  %719 = vrot.lane.b32.xlu0 %v718_v5, %s1770_s28  ;;  %v714_v11 = vld [vmem:[%s1973_s11] sm:$0xf] }
 0x224   : >> { %v735_v12 = vld [vmem:[%s1973_s11] sm:$0xf] }
 0x225   : >> { %v717_v30 = vld [vmem:[%s1970_s25] sm:$0xf] }
 0x229   : >> { %v686_v8 = vld [vmem:[%s680_s29] sm:$0xf] }
 0x22a   : >> { %687 = vrot.lane.b32.xlu1 %v686_v8, %s1770_s28  ;;  %v682_v9 = vld [vmem:[%s681_s30] sm:$0xf] }
 0x22b   : >> { %v703_v10 = vld [vmem:[%s681_s30] sm:$0xf] }
 0x22c   : >> { %v685_v18 = vld [vmem:[%s680_s29] sm:$0xf] }
 0x22e   : >> { %683 = vrot.lane.b32.xlu1 %v682_v9, %s1770_s28 }
 0x232   : >> { %704 = vrot.lane.b32.xlu1 %v703_v10, %s1771_s10 }
 0x236   : >> { %715 = vrot.lane.b32.xlu1 %v714_v11, %s1770_s28 }
 0x23a   : >> { %736 = vrot.lane.b32.xlu1 %v735_v12, %s1771_s10 }
 0x295   : >> { %v720_v20 = vpop.permute.xlu0 %719 }
 0x296   : >> { %v724_v22 = vsel %vm691_vm5, %v718_v5, %v720_v20 }
 0x29c   : >> { %v688_v13 = vpop.permute.xlu1 %687 }
 0x29d   : >> { %v692_v14 = vsel %vm691_vm5, %v686_v8, %v688_v13 }
 0x2a0   : >> { %v684_v15 = vpop.permute.xlu1 %683 }
 0x2a1   : >> { %v696_v16 = vsel %vm695_vm6, %v684_v15, %v692_v14 }
 0x2a2   : >> { %v702_v17 = vsel %vm1471_vm2, %v696_v16, 0.0 }
 0x2a3   : >> { %710 = vst [vmem:[%s680_s29] sm:$0xf] %v702_v17 }
 0x2a4   : >> { %v705_v19 = vpop.permute.xlu1 %704 }
 0x2a5   : >> { %v709_v21 = vsel %vm708_vm7, %v685_v18, %v705_v19 }
 0x2a6   : >> { %711 = vst [vmem:[%s681_s30] sm:$0xf] %v709_v21 }
 0x2a8   : >> { %v716_v23 = vpop.permute.xlu1 %715 }
 0x2a9   : >> { %v728_v24 = vsel %vm695_vm6, %v716_v23, %v724_v22 }
 0x2aa   : >> { %v746_v25 = vld [vmem:[%s744_s12] ss:$0 sm:$0xff]  ;;  %v1685_v27 = vld [vmem:[%s744_s12 + $0x3] ss:$0 sm:$0xff]  ;;  %v734_v29 = vsel %vm1471_vm2, %v728_v24, 0.0 }
 0x2ab   : >> { %v1684_v26 = vld [vmem:[%s744_s12 - $0x1] sm:$0xe]  ;;  %742 = vst [vmem:[%s1970_s25] sm:$0xf] %v734_v29 }
 0x2ac   : >> { %v753_v28 = vsel %vm752_vm14, %v746_v25, %v1684_v26  ;;  %v737_v31 = vpop.permute.xlu1 %736 }
 0x2ad   : >> { %756 = vst [vmem:[%s744_s12] sm:$0xf] %v753_v28  ;;  %v770_v32 = vld [vmem:[%s768_s13] ss:$0 sm:$0xff]  ;;  %v1689_v34 = vld [vmem:[%s768_s13 + $0x3] ss:$0 sm:$0xff]  ;;  %v741_v35 = vsel %vm708_vm7, %v717_v30, %v737_v31 }
 0x2ae   : >> { %v1688_v33 = vld [vmem:[%s768_s13 - $0x1] sm:$0xe]  ;;  %743 = vst [vmem:[%s1973_s11] sm:$0xf] %v741_v35 }
 0x2af   : >> { %v777_v36 = vsel %vm752_vm14, %v770_v32, %v1688_v33 }
 0x2b0   : >> { %780 = vst [vmem:[%s768_s13] sm:$0xf] %v777_v36 }
 0x2b2   : >> { %v757_v37 = vld [vmem:[%s745_s14] ss:$0 sm:$0xff]  ;;  %v1687_v38 = vld [vmem:[%s745_s14 + $0x1] sm:$0x7] }
 0x2b3   : >> { %1686 = vst [vmem:[%s744_s12 + $0x1] sm:$0x1] %v757_v37  ;;  %v765_v39 = vsel %vm764_vm15, %v1685_v27, %v1687_v38 }
 0x2b4   : >> { %767 = vst [vmem:[%s745_s14] sm:$0xf] %v765_v39 }
 0x2b5   : >> { %v781_v40 = vld [vmem:[%s769_s15] ss:$0 sm:$0xff]  ;;  %v1691_v41 = vld [vmem:[%s769_s15 + $0x1] sm:$0x7] }
 0x2b6   : >> { %1690 = vst [vmem:[%s768_s13 + $0x1] sm:$0x1] %v781_v40  ;;  %v789_v42 = vsel %vm764_vm15, %v1689_v34, %v1691_v41 }
 0x2b7   : >> { %791 = vst [vmem:[%s769_s15] sm:$0xf] %v789_v42  ;;  %427 = sbr.rel (!%p425_p1) target bundleno = 251 (0xfb), region = 435 }
 0x2ba   : > { %v339_v43 = vld [vmem:[%s333_s0] sm:$0xf] (%p425_p1) }
 0x2bb   : > { %v340_v45 = vsel (%p425_p1), %vm1471_vm2, %v339_v43, 0.0  ;;  %v375_v47 = vld [vmem:[%s369_s2] sm:$0xf] (%p425_p1) }
 0x2bc   : > { %v341_v49 = vmul.f32 %v340_v45, %v340_v45  ;;  %v376_v51 = vsel %vm1471_vm2, %v375_v47, 0.0 }
 0x2bd   : > { %v358_v44 = vld [vmem:[%s352_s1] sm:$0xf]  ;;  %v377_v53 = vmul.f32 %v376_v51, %v376_v51 }
 0x2be   : > { %v359_v46 = vsel %vm1471_vm2, %v358_v44, 0.0  ;;  %v392_v48 = vld [vmem:[%s386_s3] sm:$0xf]  ;;  %v345_v56 = vsel %vm344_vm8, 0.0, %v341_v49 }
 0x2bf   : > { %v360_v50 = vmul.f32 %v359_v46, %v359_v46  ;;  %v393_v52 = vsel %vm1471_vm2, %v392_v48, 0.0 }
 0x2c0   : > { %v394_v55 = vmul.f32 %v393_v52, %v393_v52 }
 0x2c1   : > { %v362_v54 = vadd.f32 %v360_v50, %v341_v49  ;;  %v361_v57 = vadd.f32 %v360_v50, %v345_v56 }
 0x2c2   : > { %v398_v60 = vsel %vm397_vm9, 0.0, %v394_v55 }
 0x2c3   : > { %v379_v58 = vadd.f32 %v377_v53, %v362_v54  ;;  %v378_v59 = vadd.f32 %v377_v53, %v361_v57 }
 0x2c5   : > { %v400_v61 = vadd.f32 %v394_v55, %v379_v58  ;;  %v399_v62 = vadd.f32 %v398_v60, %v378_v59 }
 0x2c7   : > { %401 = vadd.xlane.f32.xlu0 %v400_v61 }
 0x2cb   : > { %409 = vadd.xlane.f32.xlu0 %v399_v62 }
 0x350   : > { %v402_v63 = vpop.xlane.xlu0 %401 }
 0x351   : > { %v403_v0 = vrot.slane %v402_v63, 4 }
 0x353   : > { %v404_v1 = vadd.f32 %v403_v0, %v402_v63 }
 0x354   : > { %v410_v2 = vpop.xlane.xlu0 %409 }
 0x355   : > { %v405_v3 = vrot.slane %v404_v1, 2  ;;  %v411_v4 = vrot.slane %v410_v2, 4 }
 0x357   : > { %v412_v5 = vadd.f32 %v411_v4, %v410_v2  ;;  %v406_v8 = vadd.f32 %v405_v3, %v404_v1 }
 0x359   : > { %v413_v9 = vrot.slane %v412_v5, 2  ;;  %v407_v11 = vrot.slane %v406_v8, 1 }
 0x35b   : > { %v414_v10 = vadd.f32 %v413_v9, %v412_v5  ;;  %v408_v14 = vadd.f32 %v407_v11, %v406_v8 }
 0x35d   : > { %v415_v12 = vrot.slane %v414_v10, 1 }
 0x35f   : > { %v416_v13 = vadd.f32 %v415_v12, %v414_v10 }
 0x361   : > { %1722 = vpush %v416_v13 }
 0x362   : > { %1724 = vpush %v408_v14 }
 0x392   : > { %s1723_s27 = spop %1722 }
 0x393   : > { %s1725_s17 = spop %1724 }
 0x394   : > { %s419_s18 = smul.f32 1e-10, %s1725_s17 }
 0x396   : > { %p420_p3 = scmp.le.f32.partialorder %s1723_s27, %s419_s18 }
 0x398   : > { %p422_p4 = por %p421_p2, %p420_p3 }
 0x39a   :  { %870 = sbr.rel (!%p422_p4) target bundleno = 250 (0xfa), region = 446 }
 0x39f PF:  { %s871_s19 = smov [#allocation20]  ;;  %v875_v6 = vmov %v1834_v6  ;;  %v878_v7 = vmov %v1836_v7  ;;  %v931_v15 = vld [vmem:[#allocation12] sm:$0xf]  ;;  %v939_v16 = vld [vmem:[#allocation14] sm:$0xf]  ;;  %s891_s20 = smov [#allocation23] }
 0x3a0   :  { %v895_v6 = vmov %v1834_v6  ;;  %v898_v7 = vmov %v1836_v7  ;;  %v879_v17 = vld [vmem:[%s871_s19] sm:$0xf]  ;;  %vm882_vm10 = vcmp.eq.s32.totalorder %v878_v7, %v875_v6  ;;  %934 = vst [vmem:[#allocation13] sm:$0xf] %v931_v15  ;;  %942 = vst [vmem:[#allocation15] sm:$0xf] %v939_v16 }
 0x3a1   :  { %vm902_vm11 = vcmp.eq.s32.totalorder %v898_v7, %v895_v6  ;;  %v947_v18 = vld [vmem:[#allocation16] sm:$0xf]  ;;  %v883_v19 = vsel %vm882_vm10, %v879_v17, 0.0  ;;  %v899_v20 = vld [vmem:[%s891_s20] sm:$0xf]  ;;  %s872_s30 = smov [#allocation8] }
 0x3a2   :  { %950 = vst [vmem:[#allocation17] sm:$0xf] %v947_v18  ;;  %v955_v21 = vld [vmem:[#allocation18] sm:$0xf]  ;;  %v884_v22 = vrot.slane %v883_v19, 4  ;;  %v903_v23 = vsel %vm902_vm11, %v899_v20, 0.0 }
 0x3a3   :  { %958 = vst [vmem:[#allocation19] sm:$0xf] %v955_v21  ;;  %v904_v24 = vrot.slane %v903_v23, 4 }
 0x3a4   :  { %v885_v25 = vadd.f32 %v884_v22, %v883_v19 }
 0x3a5   :  { %v905_v26 = vadd.f32 %v904_v24, %v903_v23 }
 0x3a6   :  { %v886_v27 = vrot.slane %v885_v25, 2 }
 0x3a7   :  { %v906_v28 = vrot.slane %v905_v26, 2  ;;  %v1150_v29 = vld [vmem:[#allocation13] sm:$0xf]  ;;  %v1213_v30 = vld [vmem:[#allocation15] sm:$0xf] }
 0x3a8   :  { %v887_v31 = vadd.f32 %v886_v27, %v885_v25  ;;  %1151 = vst [vmem:[%s2058_s6] sm:$0xf] %v1150_v29  ;;  %1214 = vst [vmem:[%s2059_s7] sm:$0xf] %v1213_v30  ;;  %s892_s6 = smov [#allocation10] }
 0x3a9   :  { %v1276_v6 = vld [vmem:[#allocation17] sm:$0xf]  ;;  %v907_v7 = vadd.f32 %v906_v28, %v905_v26 }
 0x3aa   :  { %1277 = vst [vmem:[%s2060_s8] sm:$0xf] %v1276_v6  ;;  %v1339_v32 = vld [vmem:[#allocation19] sm:$0xf]  ;;  %v888_v33 = vrot.slane %v887_v31, 1 }
 0x3ab   :  { %1340 = vst [vmem:[%s2061_s9] sm:$0xf] %v1339_v32  ;;  %v908_v34 = vrot.slane %v907_v7, 1 }
 0x3ac   :  { %v889_v35 = vadd.f32 %v888_v33, %v887_v31 }
 0x3ad   :  { %v909_v36 = vadd.f32 %v908_v34, %v907_v7 }
 0x3ae   :  { %890 = vst [vmem:[%s872_s30] sm:$0x1] %v889_v35 }
 0x3af   :  { %910 = vst [vmem:[%s892_s6] sm:$0x1] %v909_v36 }
 0x3b5   :  { %v915_v37 = vld [vmem:[#allocation8] sm:$0x1] }
 0x3b6   :  { %918 = vst [vmem:[#allocation9] sm:$0x1] %v915_v37  ;;  %v923_v38 = vld [vmem:[#allocation10] sm:$0x1] }
 0x3b7   :  { %926 = vst [vmem:[#allocation11] sm:$0x1] %v923_v38 }
 0x3bd   :  { %v1022_v39 = vld [vmem:[#allocation9] sm:$0x1] }
 0x3be   :  { %1023 = vst [vmem:[%s2056_s4] sm:$0x1] %v1022_v39  ;;  %v1087_v40 = vld [vmem:[#allocation11] sm:$0x1] }
 0x3bf   :  { %1088 = vst [vmem:[%s2057_s5] sm:$0x1] %v1087_v40 }

// kernel: reverse
= control target key start
LH: loop header
LB: loop body
LE: loop exit
PB: predicated region body
PF: predicated region fallthrough
CT: control target
= control target key end

     0   :  { %v2_v0 = vlaneseq  ;;  %s130_s0 = inlined_call_operand.vmem [shape: f32[8], index: 0, kind: input, shape index: {}]   ;;  %s131_s1 = inlined_call_operand.vmem [shape: f32[8], index: 1, kind: output, shape index: {}]  }
   0x2   :  { %v3_v1 = vsub.s32 7, %v2_v0 }
   0x4   :  { %4 = vset.pattern.permute.xlu0 %v3_v1 }
   0x5   :  { %v46_v2 = vld [vmem:[#allocation1] sm:$0x1]  ;;  %v22_v3 = vld [vmem:[%s130_s0] sm:$0x1]  ;;  %v61_v10 = vshrl.u32 %v2_v0, 7 }
   0x6   :  { %47 = vst [vmem:[#allocation0] sm:$0x1] %v46_v2  ;;  %23 = vst [vmem:[#allocation1 + $0x1] sm:$0x1] %v22_v3 }
   0x7   :  { %vm62_vm0 = vcmp.lt.s32.totalorder %v61_v10, 1 }
   0xd   :  { %v49_v4 = vld [vmem:[#allocation0 + $0x7] ss:$-1 sm:$0xff]  ;;  %v43_v5 = vld [vmem:[#allocation1 + $0x1] sm:$0x1] }
   0xe   :  { %v50_v6 = vrot.slane %v49_v4, 7  ;;  %45 = vst [vmem:[#allocation0 + $0x8] sm:$0x1] %v43_v5 }
  0x10   :  { %51 = vperm.xlu0 %4, %v50_v6  }
  0x15   :  { %v56_v7 = vld [vmem:[#allocation0 + $0xf] ss:$-1 sm:$0xff] }
  0x16   :  { %v57_v8 = vrot.slane %v56_v7, 7 }
  0x18   :  { %58 = vperm.xlu0 %4, %v57_v8  }
  0x8b   :  { %v52_v9 = vpop.permute.xlu0 %51 }
  0x8c   :  { %53 = vst [vmem:[#allocation2] sm:$0xff] %v52_v9 }
  0x93   :  { %v59_v11 = vpop.permute.xlu0 %58 }
  0x94   :  { %63 = vst.msk [vmem:[#allocation2] sm:$0xff] %vm62_vm0, %v59_v11 }
  0x9b   :  { %v68_v12 = vld [vmem:[#allocation2] sm:$0x1] }
  0x9c   :  { %71 = vst [vmem:[#allocation3] sm:$0x1] %v68_v12 }
  0xa3   :  { %v88_v13 = vld [vmem:[#allocation3] sm:$0x1] }
  0xa4   :  { %89 = vst [vmem:[%s131_s1] sm:$0x1] %v88_v13 }

// kernel: custom-call.16
= control target key start
LH: loop header
LB: loop body
LE: loop exit
PB: predicated region body
PF: predicated region fallthrough
CT: control target
= control target key end

     0   :  { %v327_v1 = vmov 0.0   ;;  %s347_s11 = smov 0   ;;  %s400_s0 = inlined_call_operand.vmem [shape: f32[8,8], index: 0, kind: input, shape index: {}]   ;;  %s401_s1 = inlined_call_operand.vmem [shape: f32[8,8], index: 1, kind: output, shape index: {0}]   ;;  %s402_s2 = inlined_call_operand.vmem [shape: f32[8], index: 2, kind: output, shape index: {1}]  }
   0x1   :  { %v32_v0 = vld [vmem:[%s400_s0] sm:$0xff]  ;;  %39 = vst [vmem:[#allocation2] sm:$0x1] %v327_v1 }
   0x2   :  { %38 = vst [vmem:[#allocation1] sm:$0xff] %v32_v0 }
   0x3 LB: > { %v47_v2 = vlaneseq  ;;  %v355_v5 = vstv %s325_s11  ;;  %s74_s0 = scalar_lea.vmem [#allocation1], %s325_s11  ;;  %s110_s12 = smov [#allocation1]  ;;  %v328_v58 = vmov 1.0   ;;  %s325_s11 = sphi %s347_s11, %s45_s11  }
   0x4   : > { %s132_s13 = scalar_lea.vmem [#allocation4], %s325_s11  ;;  %s148_s14 = smov [#allocation1] }
   0x5   : > { %v352_v4 = vshrl.u32 %v47_v2, 7  ;;  %v126_v47 = vand.u32 127, %v47_v2  ;;  %s149_s15 = smov [#allocation4] }
   0x7   : > { %vm51_vm0 = vcmp.gt.s32.totalorder %v352_v4, %v355_v5  ;;  %v113_v4 = vmov %v352_v4  ;;  %vm368_vm10 = vcmp.eq.s32.totalorder %v126_v47, %v355_v5  ;;  %vm178_vm13 = vcmp.gt.s32.totalorder %v126_v47, %v355_v5 }
   0x8   : > { %vm117_vm7 = vcmp.gt.s32.totalorder %v113_v4, %v355_v5  ;;  %vm118_vm8 = vcmp.lt.s32.totalorder %v113_v4, 8  ;;  %v145_v59 = vld [vmem:[#allocation2] ss:$0 sm:$0xff]  ;;  %v152_v4 = vmov %v352_v4 }
   0x9   : > { %v46_v3 = vld [vmem:[#allocation1] sm:$0xff]  ;;  %vm119_vm9 = vmand %vm117_vm7, %vm118_vm8  ;;  %vm157_vm11 = vcmp.lt.s32.totalorder %v152_v4, 8  ;;  %v169_v4 = vmov %v352_v4 }
   0xa   : > { %v54_v6 = vsel %vm51_vm0, %v46_v3, 0.0  ;;  %v75_v14 = vld [vmem:[%s74_s0] ss:$0 sm:$0xff]  ;;  %vm186_vm12 = vcmp.ge.s32.totalorder %v169_v4, %v355_v5 }
   0xb   : > { %v55_v7 = vmul.f32 %v54_v6, %v54_v6  ;;  %v76_v15 = vand.u32 2147483647, %v75_v14  ;;  %vm101_vm6 = vcmp.lt.f32.partialorder %v75_v14, 0.0  ;;  %v114_v44 = vld [vmem:[%s110_s12] sm:$0xff]  ;;  %vm187_vm14 = vmand %vm368_vm10, %vm186_vm12 }
   0xc   : > { %v120_v48 = vsel %vm119_vm9, %v114_v44, 0.0  ;;  %v155_v62 = vld [vmem:[%s148_s14] sm:$0xff]  ;;  %s165_s14 = smov %s148_s14 }
   0xd   : > { %v56_v8 = vrot.slane %v55_v7, 4  ;;  %v77_v20 = vmax.f32 %v76_v15, 0.0  ;;  %s190_s16 = scalar_lea.vmem %s165_s14, %s325_s11  ;;  %s45_s11 = sadd.s32 1, %s325_s11  }
   0xe   : > { %p42_p0 = scmp.ge.s32.totalorder %s45_s11, 8  }
   0xf   : > { %v57_v9 = vadd.f32 %v56_v8, %v55_v7 }
  0x11   : > { %v58_v10 = vrot.slane %v57_v9, 2 }
  0x13   : > { %v59_v11 = vadd.f32 %v58_v10, %v57_v9 }
  0x15   : > { %v60_v12 = vrot.slane %v59_v11, 1 }
  0x17   : > { %v61_v13 = vadd.f32 %v60_v12, %v59_v11  ;;  %v176_v12 = vld [vmem:[%s165_s14] sm:$0xff] }
  0x19   : > { %309 = vrsqrt.f32 %v61_v13  ;;  %vm64_vm1 = vcmp.eq.f32.partialorder %v61_v13, inf  ;;  %v67_v17 = vand.u32 2147483648, %v61_v13  ;;  %vm66_vm2 = vcmp.eq.f32.partialorder %v61_v13, 0.0 }
  0x26   : > { %v310_v16 = vpop.eup %309 }
  0x27   : > { %v63_v18 = vmul.f32 %v310_v16, %v61_v13 }
  0x29   : > { %v65_v19 = vsel %vm64_vm1, %v61_v13, %v63_v18 }
  0x2a   : > { %v68_v21 = vsel %vm66_vm2, %v67_v17, %v65_v19 }
  0x2b   : > { %v78_v22 = vand.u32 2147483647, %v68_v21 }
  0x2d   : > { %v79_v23 = vmax.f32 %v77_v20, %v78_v22 }
  0x2f   : > { %311 = vrcp.f32 %v79_v23  ;;  %vm91_vm5 = vcmp.eq.f32.partialorder %v79_v23, 0.0 }
  0x3c   : > { %v312_v24 = vpop.eup %311 }
  0x3d   : > { %v81_v25 = vmul.f32 %v312_v24, %v76_v15  ;;  %v84_v26 = vmul.f32 0.0, %v312_v24  ;;  %v88_v27 = vmul.f32 %v312_v24, %v78_v22 }
  0x3f   : > { %v82_v28 = vmul.f32 %v81_v25, %v81_v25  ;;  %v85_v29 = vmul.f32 %v84_v26, %v84_v26  ;;  %v89_v30 = vmul.f32 %v88_v27, %v88_v27 }
  0x41   : > { %v86_v31 = vadd.f32 %v85_v29, %v82_v28 }
  0x43   : > { %v90_v32 = vadd.f32 %v89_v30, %v86_v31 }
  0x45   : > { %313 = vrsqrt.f32 %v90_v32  ;;  %vm94_vm3 = vcmp.eq.f32.partialorder %v90_v32, inf  ;;  %v97_v34 = vand.u32 2147483648, %v90_v32  ;;  %vm96_vm4 = vcmp.eq.f32.partialorder %v90_v32, 0.0 }
  0x52   : > { %v314_v33 = vpop.eup %313 }
  0x53   : > { %v93_v35 = vmul.f32 %v314_v33, %v90_v32 }
  0x55   : > { %v95_v36 = vsel %vm94_vm3, %v90_v32, %v93_v35 }
  0x56   : > { %v98_v37 = vsel %vm96_vm4, %v97_v34, %v95_v36 }
  0x57   : > { %v99_v38 = vmul.f32 %v98_v37, %v79_v23 }
  0x59   : > { %v100_v39 = vsel %vm91_vm5, 0.0, %v99_v38 }
  0x5a   : > { %v102_v40 = vxor.u32 2147483648, %v100_v39 }
  0x5c   : > { %v103_v41 = vsel %vm101_vm6, %v100_v39, %v102_v40 }
  0x5d   : > { %v362_v42 = vsel %vm66_vm2, %v75_v14, %v103_v41  ;;  %315 = vrcp.f32 %v103_v41  ;;  %v104_v45 = vsub.f32 %v103_v41, %v75_v14 }
  0x5e   : > { %v109_v43 = vsub.f32 %v75_v14, %v362_v42 }
  0x60   : > { %317 = vrcp.f32 %v109_v43 }
  0x6a   : > { %v316_v46 = vpop.eup %315 }
  0x6b   : > { %v106_v49 = vmul.f32 %v316_v46, %v104_v45 }
  0x6d   : > { %v318_v50 = vpop.eup %317  ;;  %v108_v54 = vsel %vm66_vm2, 0.0, %v106_v49 }
  0x6e   : > { %v122_v51 = vmul.f32 %v318_v50, %v120_v48  ;;  %v138_v56 = vsel %vm368_vm10, %v108_v54, 0.0 }
  0x70   : > { %v123_v53 = vsel %vm66_vm2, 0.0, %v122_v51 }
  0x71   : > { %v128_v55 = vsel %vm368_vm10, %v123_v53, 0.0 }
  0x72   : > { %129 = vadd.xlane.f32.xlu0 %v128_v55 }
  0x76   : > { %139 = vadd.xlane.f32.xlu0 %v138_v56 }
  0xfb   : > { %v130_v57 = vpop.xlane.xlu0 %129 }
  0xfc   : > { %131 = vst [vmem:[#allocation4] sm:$0xff] %v130_v57 }
  0xfd   : > { %133 = vst [vmem:[%s132_s13] sm:$0x1] %v328_v58 }
  0xff   : > { %v140_v60 = vpop.xlane.xlu0 %139 }
 0x100   : > { %v146_v61 = vsel %vm368_vm10, %v140_v60, %v145_v59 }
 0x101   : > { %147 = vst [vmem:[#allocation2] sm:$0x1] %v146_v61 }
 0x104   : > { %v154_v63 = vld [vmem:[%s149_s15] sm:$0xff]  ;;  %s166_s15 = smov %s149_s15 }
 0x105   : > { %v156_v0 = vmul.f32 %v155_v62, %v154_v63  ;;  %v174_v11 = vld [vmem:[%s166_s15] sm:$0xff] }
 0x107   : > { %v158_v1 = vsel %vm157_vm11, %v156_v0, 0.0 }
 0x108   : > { %v159_v2 = vrot.slane %v158_v1, 4  ;;  %v202_v4 = vld [vmem:[#allocation2] sm:$0x1] (%p42_p0) }
 0x109   :  { %205 = vst [vmem:[#allocation3] sm:$0x1] (%p42_p0), %v202_v4 }
 0x10a   : > { %v160_v3 = vadd.f32 %v159_v2, %v158_v1 }
 0x10c   : > { %v161_v6 = vrot.slane %v160_v3, 2 }
 0x10e   : > { %v162_v7 = vadd.f32 %v161_v6, %v160_v3 }
 0x110   : > { %v163_v8 = vrot.slane %v162_v7, 1  ;;  %v257_v19 = vld [vmem:[#allocation3] sm:$0x1] (%p42_p0) }
 0x111   :  { %258 = vst [vmem:[%s402_s2] sm:$0x1] (%p42_p0), %v257_v19 }
 0x112   : > { %v164_v9 = vadd.f32 %v163_v8, %v162_v7 }
 0x114   : > { %v170_v10 = vmul.f32 %v164_v9, %v140_v60 }
 0x116   : > { %v175_v13 = vmul.f32 %v174_v11, %v170_v10 }
 0x118   : > { %v179_v14 = vsub.f32 %v176_v12, %v175_v13 }
 0x11a   : > { %v180_v15 = vsel %vm178_vm13, %v179_v14, %v176_v12 }
 0x11b   : > { %v188_v16 = vsel %vm187_vm14, %v174_v11, %v180_v15 }
 0x11c   : > { %189 = vst [vmem:[%s165_s14] sm:$0xff] %v188_v16 }
 0x121   :  { %44 = sbr.rel (!%p42_p0) target bundleno = 3 (0x3), region = 139 }
 0x123   : > { %v191_v17 = vld [vmem:[%s190_s16] ss:$0 sm:$0xff] }
 0x124   : > { %v196_v18 = vsel %vm368_vm10, %v362_v42, %v191_v17 }
 0x125   : > { %197 = vst [vmem:[%s190_s16] sm:$0x1] %v196_v18 }
 0x12c   :  { %v234_v5 = vld [vmem:[#allocation1] sm:$0xff] }
 0x12d   :  { %235 = vst [vmem:[%s401_s1] sm:$0xff] %v234_v5 }

</bundles_post_ra>
